<compile_context>
chip_gen: v7x
topology: tpu7x:2x2x1
jax: 0.10.0
libtpu: 0.0.40
codegen_flags: <defaults>
</compile_context>

<pallas_src>
import functools

import jax
import jax.numpy as jnp
from jax import lax
from jax.experimental import pallas as pl
from jax.experimental.pallas import tpu as pltpu


_VMEM_LIMIT = 48 * 1024 * 1024  # below v7x's 64 MiB physical, above default scoped limits


def _pick_tile(n, prefs=(512, 256, 128, 64, 32, 16, 8)):
    """Largest preferred tile (multiple of 8) that divides n, else n (full block)."""
    for t in prefs:
        if n % t == 0:
            return t
    return n


# --------------------------------------------------------------------------------------
# Kernel 1: x5 = conv1x1(x) + x ; fused q/k projection.  Row-tiled, parallel grid.
# --------------------------------------------------------------------------------------
def _proj_kernel(x_ref, wc_ref, bc_ref, wqk_ref, bqk_ref, x5_ref, q_ref, k_ref):
    x = x_ref[...]                                           # (TM, C) f32
    C = x.shape[1]

    # x5 = conv1x1(x) + x   (bf16 MXU operands, f32 accumulate, f32 elementwise tail)
    x5 = jnp.dot(x.astype(jnp.bfloat16), wc_ref[...],
                 preferred_element_type=jnp.float32)
    x5 = x5 + bc_ref[...] + x                                # (TM, C) f32
    x5_ref[...] = x5

    # fused query/key 1x1 conv: one [TM,C] @ [C,2C] matmul fills the MXU width
    qk = jnp.dot(x5.astype(jnp.bfloat16), wqk_ref[...],
                 preferred_element_type=jnp.float32) + bqk_ref[...]
    q_ref[...] = qk[:, :C].astype(jnp.bfloat16)
    k_ref[...] = qk[:, C:].astype(jnp.bfloat16)


# --------------------------------------------------------------------------------------
# Kernel 2: streaming attention reduction -> x_w -> mask -> seeds.  Grid over query
# batches (parallel).  Never materialises the [N, N] score matrix; all per-position
# vectors are lane-dense [1, HW] rows.
# --------------------------------------------------------------------------------------
def _attn_mask_seed_kernel(B, HW, TK, scale, q_ref, k_ref, x5_ref, mask_ref, seed_ref):
    q = q_ref[0]                                             # (HW, C) bf16, this batch's queries

    # x_w[p_q] = scale * mean_bk max_pk <q[p_q], k[bk, pk]>   (streamed over key tiles)
    acc = jnp.zeros((1, HW), jnp.float32)
    n_tiles = HW // TK
    for bk in range(B):                                      # static
        m = jnp.full((1, HW), -jnp.inf, jnp.float32)
        for t in range(n_tiles):                             # static
            kblk = k_ref[bk, pl.ds(t * TK, TK), :]           # (TK, C) bf16, sublane slice
            # transposed score block: (TK, HW) -> sublane max gives a lane-dense row
            s = lax.dot_general(kblk, q, (((1,), (1,)), ((), ())),
                                preferred_element_type=jnp.float32)
            m = jnp.maximum(m, jnp.max(s, axis=0, keepdims=True))
        acc = acc + m
    xw = acc * (scale / B)                                   # (1, HW) f32, lane-dense

    # mask: positions attaining the per-batch max (softmax dropped -- same argmax set)
    xw_max = jnp.max(xw, axis=-1, keepdims=True)
    maskrow = (xw == xw_max).astype(jnp.float32)             # (1, HW)
    mask_ref[...] = maskrow[None]                            # (1, 1, HW)

    # seeds[b] = sum_p norm0[b, p, :] * mask[b, p]  -> one tiny MXU matmul
    x5b = x5_ref[0]                                          # (HW, C) f32
    inv = lax.rsqrt(jnp.maximum(jnp.sum(x5b * x5b, axis=-1, keepdims=True), 1e-24))
    norm0b = x5b * inv                                       # F.normalize(x5, dim=C)
    seed = jnp.dot(maskrow, norm0b, preferred_element_type=jnp.float32)  # (1, C)
    seed_ref[...] = seed[None]                               # (1, 1, C)


# --------------------------------------------------------------------------------------
# Kernel 3: correlation maps, per-batch min-max norm, x51, proto1, out3.
# --------------------------------------------------------------------------------------
def _finalize_kernel(B, HW, training, x5_ref, seed_ref, proto_ref, out_ref):
    seeds = seed_ref[...]                                    # (B, C) f32
    C = seeds.shape[1]
    proto_acc = jnp.zeros((1, C), jnp.float32)

    for b in range(B):                                       # static
        x5b = x5_ref[b]                                      # (HW, C) f32
        inv = lax.rsqrt(jnp.maximum(jnp.sum(x5b * x5b, axis=-1, keepdims=True), 1e-24))
        norm0b = x5b * inv                                   # (HW, C)

        # correlation: conv1x1(norm0, weight=seeds) -> (HW, B), mean over the B filters
        corr = lax.dot_general(norm0b, seeds, (((1,), (1,)), ((), ())),
                               preferred_element_type=jnp.float32)
        if not training:                                     # eval path applies relu
            corr = jnp.maximum(corr, 0.0)
        cor = jnp.mean(corr, axis=-1, keepdims=True)         # (HW, 1)

        # per-batch min-max normalisation (approx reciprocal -> EUP slot)
        lo = jnp.min(cor, axis=0, keepdims=True)
        hi = jnp.max(cor, axis=0, keepdims=True)
        cormap = (cor - lo) * pl.reciprocal(hi - lo + 1e-12, approx=True)

        x51b = x5b * cormap                                  # (HW, C)
        proto_acc = proto_acc + jnp.sum(x51b, axis=0, keepdims=True)
        out_ref[b] = x51b                                    # stash x51 per batch

    proto1 = proto_acc * (1.0 / (B * HW))                    # (1, C) == mean over (B,H,W)
    proto_ref[...] = proto1
    out_ref[...] = out_ref[...] + x5_ref[...] * proto1[None]  # x5*proto1 + x51


# --------------------------------------------------------------------------------------
# Wrapper (NCHW in / NCHW out, matching the PyTorch module interface)
# --------------------------------------------------------------------------------------
def att_layer_forward(x_nchw, params, training=True):
    """Returns (x5, proto1, x5*proto1 + x51, mask) in NCHW, like AttLayer.forward."""
    B, C, H, W = x_nchw.shape
    HW = H * W
    N = B * HW
    scale = 1.0 / (C ** 0.5)

    wc, bc, wq, bq, wk, bk = params                           # conv weights are [C_out, C_in]

    # NCHW -> channel-last flattened rows (boundary glue; a channels-last caller can skip this)
    x_flat = jnp.transpose(x_nchw, (0, 2, 3, 1)).reshape(N, C).astype(jnp.float32)

    wc_t = wc.T.astype(jnp.bfloat16)                          # [C_in, C_out]
    wqk = jnp.concatenate([wq.T, wk.T], axis=1).astype(jnp.bfloat16)   # [C, 2C]
    bc_r = bc.reshape(1, C).astype(jnp.float32)
    bqk = jnp.concatenate([bq, bk], axis=0).reshape(1, 2 * C).astype(jnp.float32)

    # ---- Kernel 1: projections ---------------------------------------------------------
    TM = _pick_tile(N)
    cost1 = pl.CostEstimate(
        flops=6 * N * C * C, transcendentals=0,
        bytes_accessed=N * C * 4 + C * C * 2 + 2 * C * C * 2 + 12 * C
                       + N * C * 4 + 2 * N * C * 2)
    x5f, qf, kf = pl.pallas_call(
        _proj_kernel,
        out_shape=(jax.ShapeDtypeStruct((N, C), jnp.float32),
                   jax.ShapeDtypeStruct((N, C), jnp.bfloat16),
                   jax.ShapeDtypeStruct((N, C), jnp.bfloat16)),
        grid=(N // TM,),
        in_specs=[pl.BlockSpec((TM, C), lambda i: (i, 0)),
                  pl.BlockSpec((C, C), lambda i: (0, 0)),
                  pl.BlockSpec((1, C), lambda i: (0, 0)),
                  pl.BlockSpec((C, 2 * C), lambda i: (0, 0)),
                  pl.BlockSpec((1, 2 * C), lambda i: (0, 0))],
        out_specs=[pl.BlockSpec((TM, C), lambda i: (i, 0)),
                   pl.BlockSpec((TM, C), lambda i: (i, 0)),
                   pl.BlockSpec((TM, C), lambda i: (i, 0))],
        compiler_params=pltpu.CompilerParams(
            dimension_semantics=("parallel",), vmem_limit_bytes=_VMEM_LIMIT),
        cost_estimate=cost1,
    )(x_flat, wc_t, bc_r, wqk, bqk)

    # free reshapes (contiguous): [N, C] -> [B, HW, C]
    q3 = qf.reshape(B, HW, C)
    k3 = kf.reshape(B, HW, C)
    x53 = x5f.reshape(B, HW, C)

    # ---- Kernel 2: streaming attention reduction -> mask & seeds ------------------------
    TK = _pick_tile(HW)
    cost2 = pl.CostEstimate(
        flops=2 * N * N * C + 2 * B * HW * C, transcendentals=N,
        bytes_accessed=2 * N * C * 2 + N * C * 4 + B * HW * 4 + B * C * 4)
    kernel2 = functools.partial(_attn_mask_seed_kernel, B, HW, TK, scale)
    maskf, seedf = pl.pallas_call(
        kernel2,
        out_shape=(jax.ShapeDtypeStruct((B, 1, HW), jnp.float32),
                   jax.ShapeDtypeStruct((B, 1, C), jnp.float32)),
        grid=(B,),
        in_specs=[pl.BlockSpec((1, HW, C), lambda b: (b, 0, 0)),   # this batch's queries
                  pl.BlockSpec((B, HW, C), lambda b: (0, 0, 0)),   # all keys (resident)
                  pl.BlockSpec((1, HW, C), lambda b: (b, 0, 0))],  # this batch's x5
        out_specs=[pl.BlockSpec((1, 1, HW), lambda b: (b, 0, 0)),
                   pl.BlockSpec((1, 1, C), lambda b: (b, 0, 0))],
        compiler_params=pltpu.CompilerParams(
            dimension_semantics=("parallel",), vmem_limit_bytes=_VMEM_LIMIT),
        cost_estimate=cost2,
    )(q3, k3, x53)

    seeds2 = seedf.reshape(B, C)

    # ---- Kernel 3: correlation + min-max + x51 + proto1 + out3 --------------------------
    cost3 = pl.CostEstimate(
        flops=2 * N * B * C + 8 * N * C, transcendentals=N + B,
        bytes_accessed=2 * N * C * 4 + B * C * 4 + C * 4)
    kernel3 = functools.partial(_finalize_kernel, B, HW, training)
    protof, out3f = pl.pallas_call(
        kernel3,
        out_shape=(jax.ShapeDtypeStruct((1, C), jnp.float32),
                   jax.ShapeDtypeStruct((B, HW, C), jnp.float32)),
        grid=(1,),
        in_specs=[pl.BlockSpec((B, HW, C), lambda i: (0, 0, 0)),
                  pl.BlockSpec((B, C), lambda i: (0, 0))],
        out_specs=[pl.BlockSpec((1, C), lambda i: (0, 0)),
                   pl.BlockSpec((B, HW, C), lambda i: (0, 0, 0))],
        compiler_params=pltpu.CompilerParams(
            dimension_semantics=("arbitrary",), vmem_limit_bytes=_VMEM_LIMIT),
        cost_estimate=cost3,
    )(x53, seeds2)

    # channel-last -> NCHW boundary glue
    x5 = jnp.transpose(x5f.reshape(B, H, W, C), (0, 3, 1, 2))
    proto1 = protof.reshape(1, C, 1, 1)
    out3 = jnp.transpose(out3f.reshape(B, H, W, C), (0, 3, 1, 2))
    mask = maskf.reshape(B, 1, H, W)
    return x5, proto1, out3, mask


def init_params(key, C):
    ks = jax.random.split(key, 6)
    wc = jax.random.normal(ks[0], (C, C), jnp.float32) * 0.05
    bc = jax.random.normal(ks[1], (C,), jnp.float32) * 0.05
    wq = jax.random.normal(ks[2], (C, C), jnp.float32) * 0.05
    bq = jax.random.normal(ks[3], (C,), jnp.float32) * 0.05
    wk = jax.random.normal(ks[4], (C, C), jnp.float32) * 0.05
    bk = jax.random.normal(ks[5], (C,), jnp.float32) * 0.05
    return wc, bc, wq, bq, wk, bk


if __name__ == "__main__":
    # Small shapes consistent with the module (input_channels scaled down to 128).
    B, C, H, W = 2, 128, 8, 8

    key = jax.random.PRNGKey(0)
    kx, kp = jax.random.split(key)
    x = jax.random.normal(kx, (B, C, H, W), jnp.float32)
    params = init_params(kp, C)

    # training=True matches a freshly constructed nn.Module (no relu in correlation()).
    fwd = jax.jit(functools.partial(att_layer_forward, training=True))
    outs = jax.block_until_ready(fwd(x, params))

    x5, proto1, out3, mask = outs
    assert x5.shape == (B, C, H, W)
    assert proto1.shape == (1, C, 1, 1)
    assert out3.shape == (B, C, H, W)
    assert mask.shape == (B, 1, H, W)
    print("KERNEL_OK")
</pallas_src>

<mosaic_0001>
module attributes {stable_mosaic.version = 11 : i64} {
  func.func @_proj_kernel(%arg0: i32, %arg1: memref<128x128xf32, #tpu.memory_space<vmem>>, %arg2: memref<128x128xbf16, #tpu.memory_space<vmem>>, %arg3: memref<1x128xf32, #tpu.memory_space<vmem>>, %arg4: memref<128x256xbf16, #tpu.memory_space<vmem>>, %arg5: memref<1x256xf32, #tpu.memory_space<vmem>>, %arg6: memref<128x128xf32, #tpu.memory_space<vmem>>, %arg7: memref<128x128xbf16, #tpu.memory_space<vmem>>, %arg8: memref<128x128xbf16, #tpu.memory_space<vmem>>) attributes {dimension_semantics = [#tpu.dimension_semantics<parallel>], iteration_bounds = array<i64: 1>, scalar_prefetch = 0 : i64, scratch_operands = 0 : i64, tpu.core_type = #tpu.core_type<tc>, window_params = [{transform_indices = @transform_0, window_bounds = array<i64: 128, 128>}, {pipeline_mode = #tpu.pipeline_mode<synchronous>, transform_indices = @transform_1, window_bounds = array<i64: 128, 128>}, {pipeline_mode = #tpu.pipeline_mode<synchronous>, transform_indices = @transform_2, window_bounds = array<i64: 1, 128>}, {pipeline_mode = #tpu.pipeline_mode<synchronous>, transform_indices = @transform_3, window_bounds = array<i64: 128, 256>}, {pipeline_mode = #tpu.pipeline_mode<synchronous>, transform_indices = @transform_4, window_bounds = array<i64: 1, 256>}, {transform_indices = @transform_5, window_bounds = array<i64: 128, 128>}, {transform_indices = @transform_6, window_bounds = array<i64: 128, 128>}, {transform_indices = @transform_7, window_bounds = array<i64: 128, 128>}]} {
    %c0 = arith.constant 0 : index
    %c0_0 = arith.constant 0 : index
    %0 = vector.load %arg1[%c0, %c0_0] : memref<128x128xf32, #tpu.memory_space<vmem>>, vector<128x128xf32>
    %1 = arith.truncf %0 : vector<128x128xf32> to vector<128x128xbf16>
    %c0_1 = arith.constant 0 : index
    %c0_2 = arith.constant 0 : index
    %2 = vector.load %arg2[%c0_1, %c0_2] : memref<128x128xbf16, #tpu.memory_space<vmem>>, vector<128x128xbf16>
    %cst = arith.constant dense<0.000000e+00> : vector<128x128xf32>
    %3 = tpu.matmul %1, %2, %cst {dimension_numbers = #tpu.dot_dimension_numbers<[1], [0], [0], [1], [0, 0, 1, 1], [], []>} : vector<128x128xbf16>, vector<128x128xbf16>, vector<128x128xf32> -> vector<128x128xf32>
    %c0_3 = arith.constant 0 : index
    %c0_4 = arith.constant 0 : index
    %4 = vector.load %arg3[%c0_3, %c0_4] : memref<1x128xf32, #tpu.memory_space<vmem>>, vector<1x128xf32>
    %5 = vector.broadcast %4 : vector<1x128xf32> to vector<128x128xf32>
    %6 = arith.addf %3, %5 : vector<128x128xf32>
    %7 = arith.addf %6, %0 : vector<128x128xf32>
    %c0_5 = arith.constant 0 : index
    %c0_6 = arith.constant 0 : index
    %8 = vector.load %arg6[%c0_5, %c0_6] : memref<128x128xf32, #tpu.memory_space<vmem>>, vector<128x128xf32>
    tpu.vector_store %arg6[%c0_5, %c0_6], %7 {strides = array<i32>} : memref<128x128xf32, #tpu.memory_space<vmem>>, vector<128x128xf32>,
    %9 = arith.truncf %7 : vector<128x128xf32> to vector<128x128xbf16>
    %c0_7 = arith.constant 0 : index
    %c0_8 = arith.constant 0 : index
    %10 = vector.load %arg4[%c0_7, %c0_8] : memref<128x256xbf16, #tpu.memory_space<vmem>>, vector<128x256xbf16>
    %cst_9 = arith.constant dense<0.000000e+00> : vector<128x256xf32>
    %11 = tpu.matmul %9, %10, %cst_9 {dimension_numbers = #tpu.dot_dimension_numbers<[1], [0], [0], [1], [0, 0, 1, 1], [], []>} : vector<128x128xbf16>, vector<128x256xbf16>, vector<128x256xf32> -> vector<128x256xf32>
    %c0_10 = arith.constant 0 : index
    %c0_11 = arith.constant 0 : index
    %12 = vector.load %arg5[%c0_10, %c0_11] : memref<1x256xf32, #tpu.memory_space<vmem>>, vector<1x256xf32>
    %13 = vector.broadcast %12 : vector<1x256xf32> to vector<128x256xf32>
    %14 = arith.addf %11, %13 : vector<128x256xf32>
    %15 = vector.extract_strided_slice %14 {offsets = [0, 0], sizes = [128, 128], strides = [1, 1]} : vector<128x256xf32> to vector<128x128xf32>
    %16 = arith.truncf %15 : vector<128x128xf32> to vector<128x128xbf16>
    %c0_12 = arith.constant 0 : index
    %c0_13 = arith.constant 0 : index
    %17 = vector.load %arg7[%c0_12, %c0_13] : memref<128x128xbf16, #tpu.memory_space<vmem>>, vector<128x128xbf16>
    tpu.vector_store %arg7[%c0_12, %c0_13], %16 {strides = array<i32>} : memref<128x128xbf16, #tpu.memory_space<vmem>>, vector<128x128xbf16>,
    %18 = vector.extract_strided_slice %14 {offsets = [0, 128], sizes = [128, 128], strides = [1, 1]} : vector<128x256xf32> to vector<128x128xf32>
    %19 = arith.truncf %18 : vector<128x128xf32> to vector<128x128xbf16>
    %c0_14 = arith.constant 0 : index
    %c0_15 = arith.constant 0 : index
    %20 = vector.load %arg8[%c0_14, %c0_15] : memref<128x128xbf16, #tpu.memory_space<vmem>>, vector<128x128xbf16>
    tpu.vector_store %arg8[%c0_14, %c0_15], %19 {strides = array<i32>} : memref<128x128xbf16, #tpu.memory_space<vmem>>, vector<128x128xbf16>,
    return
  }
  func.func @transform_0(%arg0: i32) -> (i32, i32) {
    %c0_i32 = arith.constant 0 : i32
    %c0_i32_0 = arith.constant 0 : i32
    return %arg0, %c0_i32 : i32, i32
  }
  func.func @transform_1(%arg0: i32) -> (i32, i32) {
    %c0_i32 = arith.constant 0 : i32
    %c0_i32_0 = arith.constant 0 : i32
    %c0_i32_1 = arith.constant 0 : i32
    return %c0_i32, %c0_i32_0 : i32, i32
  }
  func.func @transform_2(%arg0: i32) -> (i32, i32) {
    %c0_i32 = arith.constant 0 : i32
    %c0_i32_0 = arith.constant 0 : i32
    %c0_i32_1 = arith.constant 0 : i32
    return %c0_i32, %c0_i32_0 : i32, i32
  }
  func.func @transform_3(%arg0: i32) -> (i32, i32) {
    %c0_i32 = arith.constant 0 : i32
    %c0_i32_0 = arith.constant 0 : i32
    %c0_i32_1 = arith.constant 0 : i32
    return %c0_i32, %c0_i32_0 : i32, i32
  }
  func.func @transform_4(%arg0: i32) -> (i32, i32) {
    %c0_i32 = arith.constant 0 : i32
    %c0_i32_0 = arith.constant 0 : i32
    %c0_i32_1 = arith.constant 0 : i32
    return %c0_i32, %c0_i32_0 : i32, i32
  }
  func.func @transform_5(%arg0: i32) -> (i32, i32) {
    %c0_i32 = arith.constant 0 : i32
    %c0_i32_0 = arith.constant 0 : i32
    return %arg0, %c0_i32 : i32, i32
  }
  func.func @transform_6(%arg0: i32) -> (i32, i32) {
    %c0_i32 = arith.constant 0 : i32
    %c0_i32_0 = arith.constant 0 : i32
    return %arg0, %c0_i32 : i32, i32
  }
  func.func @transform_7(%arg0: i32) -> (i32, i32) {
    %c0_i32 = arith.constant 0 : i32
    %c0_i32_0 = arith.constant 0 : i32
    return %arg0, %c0_i32 : i32, i32
  }
}

module attributes {stable_mosaic.version = 11 : i64} {
  func.func @_finalize_kernel(%arg0: i32, %arg1: memref<2x64x128xf32, #tpu.memory_space<vmem>>, %arg2: memref<2x128xf32, #tpu.memory_space<vmem>>, %arg3: memref<1x128xf32, #tpu.memory_space<vmem>>, %arg4: memref<2x64x128xf32, #tpu.memory_space<vmem>>) attributes {dimension_semantics = [#tpu.dimension_semantics<arbitrary>], iteration_bounds = array<i64: 1>, scalar_prefetch = 0 : i64, scratch_operands = 0 : i64, tpu.core_type = #tpu.core_type<tc>, window_params = [{pipeline_mode = #tpu.pipeline_mode<synchronous>, transform_indices = @transform_0, window_bounds = array<i64: 2, 64, 128>}, {pipeline_mode = #tpu.pipeline_mode<synchronous>, transform_indices = @transform_1, window_bounds = array<i64: 2, 128>}, {pipeline_mode = #tpu.pipeline_mode<synchronous>, transform_indices = @transform_2, window_bounds = array<i64: 1, 128>}, {pipeline_mode = #tpu.pipeline_mode<synchronous>, transform_indices = @transform_3, window_bounds = array<i64: 2, 64, 128>}]} {
    %c0 = arith.constant 0 : index
    %c0_0 = arith.constant 0 : index
    %0 = vector.load %arg2[%c0, %c0_0] : memref<2x128xf32, #tpu.memory_space<vmem>>, vector<2x128xf32>
    %cst = arith.constant 0.000000e+00 : f32
    %1 = vector.broadcast %cst : f32 to vector<1x128xf32>
    %c0_1 = arith.constant 0 : index
    %c0_2 = arith.constant 0 : index
    %c0_3 = arith.constant 0 : index
    %2 = vector.load %arg1[%c0_1, %c0_2, %c0_3] : memref<2x64x128xf32, #tpu.memory_space<vmem>>, vector<1x64x128xf32>
    %3 = vector.shape_cast %2 : vector<1x64x128xf32> to vector<64x128xf32>
    %4 = arith.mulf %3, %3 : vector<64x128xf32>
    %cst_4 = arith.constant dense<0.000000e+00> : vector<64xf32>
    %5 = vector.multi_reduction <add>, %4, %cst_4 [1] : vector<64x128xf32> to vector<64xf32>
    %6 = vector.shape_cast %5 : vector<64xf32> to vector<64x1xf32>
    %cst_5 = arith.constant 1.000000e-24 : f32
    %7 = vector.broadcast %cst_5 : f32 to vector<64x1xf32>
    %8 = arith.maximumf %6, %7 : vector<64x1xf32>
    %9 = math.rsqrt %8 : vector<64x1xf32>
    %10 = vector.broadcast %9 : vector<64x1xf32> to vector<64x128xf32>
    %11 = arith.mulf %3, %10 : vector<64x128xf32>
    %cst_6 = arith.constant dense<0.000000e+00> : vector<64x2xf32>
    %12 = tpu.matmul %11, %0, %cst_6 {dimension_numbers = #tpu.dot_dimension_numbers<[1], [1], [0], [0], [0, 0, 1, 0], [], []>} : vector<64x128xf32>, vector<2x128xf32>, vector<64x2xf32> -> vector<64x2xf32>
    %cst_7 = arith.constant dense<0.000000e+00> : vector<64xf32>
    %13 = vector.multi_reduction <add>, %12, %cst_7 [1] : vector<64x2xf32> to vector<64xf32>
    %14 = vector.shape_cast %13 : vector<64xf32> to vector<64x1xf32>
    %cst_8 = arith.constant 2.000000e+00 : f32
    %15 = vector.broadcast %cst_8 : f32 to vector<64x1xf32>
    %16 = arith.divf %14, %15 : vector<64x1xf32>
    %cst_9 = arith.constant dense<0x7F800000> : vector<1xf32>
    %17 = vector.multi_reduction <minimumf>, %16, %cst_9 [0] : vector<64x1xf32> to vector<1xf32>
    %18 = vector.shape_cast %17 : vector<1xf32> to vector<1x1xf32>
    %cst_10 = arith.constant dense<0xFF800000> : vector<1xf32>
    %19 = vector.multi_reduction <maximumf>, %16, %cst_10 [0] : vector<64x1xf32> to vector<1xf32>
    %20 = vector.shape_cast %19 : vector<1xf32> to vector<1x1xf32>
    %21 = vector.broadcast %18 : vector<1x1xf32> to vector<64x1xf32>
    %22 = arith.subf %16, %21 : vector<64x1xf32>
    %23 = arith.subf %20, %18 : vector<1x1xf32>
    %cst_11 = arith.constant 9.99999996E-13 : f32
    %24 = vector.broadcast %cst_11 : f32 to vector<1x1xf32>
    %25 = arith.addf %23, %24 : vector<1x1xf32>
    %26 = tpu.reciprocal %25 {approx = true} : vector<1x1xf32> -> vector<1x1xf32>
    %27 = vector.broadcast %26 : vector<1x1xf32> to vector<64x1xf32>
    %28 = arith.mulf %22, %27 : vector<64x1xf32>
    %29 = vector.broadcast %28 : vector<64x1xf32> to vector<64x128xf32>
    %30 = arith.mulf %3, %29 : vector<64x128xf32>
    %cst_12 = arith.constant dense<0.000000e+00> : vector<128xf32>
    %31 = vector.multi_reduction <add>, %30, %cst_12 [0] : vector<64x128xf32> to vector<128xf32>
    %32 = vector.shape_cast %31 : vector<128xf32> to vector<1x128xf32>
    %33 = arith.addf %1, %32 : vector<1x128xf32>
    %c0_13 = arith.constant 0 : index
    %c0_14 = arith.constant 0 : index
    %c0_15 = arith.constant 0 : index
    %34 = vector.load %arg4[%c0_13, %c0_14, %c0_15] : memref<2x64x128xf32, #tpu.memory_space<vmem>>, vector<1x64x128xf32>
    %35 = vector.shape_cast %34 : vector<1x64x128xf32> to vector<64x128xf32>
    %36 = vector.shape_cast %30 : vector<64x128xf32> to vector<1x64x128xf32>
    tpu.vector_store %arg4[%c0_13, %c0_14, %c0_15], %36 {strides = array<i32>} : memref<2x64x128xf32, #tpu.memory_space<vmem>>, vector<1x64x128xf32>,
    %c1 = arith.constant 1 : index
    %c0_16 = arith.constant 0 : index
    %c0_17 = arith.constant 0 : index
    %37 = vector.load %arg1[%c1, %c0_16, %c0_17] : memref<2x64x128xf32, #tpu.memory_space<vmem>>, vector<1x64x128xf32>
    %38 = vector.shape_cast %37 : vector<1x64x128xf32> to vector<64x128xf32>
    %39 = arith.mulf %38, %38 : vector<64x128xf32>
    %cst_18 = arith.constant dense<0.000000e+00> : vector<64xf32>
    %40 = vector.multi_reduction <add>, %39, %cst_18 [1] : vector<64x128xf32> to vector<64xf32>
    %41 = vector.shape_cast %40 : vector<64xf32> to vector<64x1xf32>
    %cst_19 = arith.constant 1.000000e-24 : f32
    %42 = vector.broadcast %cst_19 : f32 to vector<64x1xf32>
    %43 = arith.maximumf %41, %42 : vector<64x1xf32>
    %44 = math.rsqrt %43 : vector<64x1xf32>
    %45 = vector.broadcast %44 : vector<64x1xf32> to vector<64x128xf32>
    %46 = arith.mulf %38, %45 : vector<64x128xf32>
    %cst_20 = arith.constant dense<0.000000e+00> : vector<64x2xf32>
    %47 = tpu.matmul %46, %0, %cst_20 {dimension_numbers = #tpu.dot_dimension_numbers<[1], [1], [0], [0], [0, 0, 1, 0], [], []>} : vector<64x128xf32>, vector<2x128xf32>, vector<64x2xf32> -> vector<64x2xf32>
    %cst_21 = arith.constant dense<0.000000e+00> : vector<64xf32>
    %48 = vector.multi_reduction <add>, %47, %cst_21 [1] : vector<64x2xf32> to vector<64xf32>
    %49 = vector.shape_cast %48 : vector<64xf32> to vector<64x1xf32>
    %cst_22 = arith.constant 2.000000e+00 : f32
    %50 = vector.broadcast %cst_22 : f32 to vector<64x1xf32>
    %51 = arith.divf %49, %50 : vector<64x1xf32>
    %cst_23 = arith.constant dense<0x7F800000> : vector<1xf32>
    %52 = vector.multi_reduction <minimumf>, %51, %cst_23 [0] : vector<64x1xf32> to vector<1xf32>
    %53 = vector.shape_cast %52 : vector<1xf32> to vector<1x1xf32>
    %cst_24 = arith.constant dense<0xFF800000> : vector<1xf32>
    %54 = vector.multi_reduction <maximumf>, %51, %cst_24 [0] : vector<64x1xf32> to vector<1xf32>
    %55 = vector.shape_cast %54 : vector<1xf32> to vector<1x1xf32>
    %56 = vector.broadcast %53 : vector<1x1xf32> to vector<64x1xf32>
    %57 = arith.subf %51, %56 : vector<64x1xf32>
    %58 = arith.subf %55, %53 : vector<1x1xf32>
    %cst_25 = arith.constant 9.99999996E-13 : f32
    %59 = vector.broadcast %cst_25 : f32 to vector<1x1xf32>
    %60 = arith.addf %58, %59 : vector<1x1xf32>
    %61 = tpu.reciprocal %60 {approx = true} : vector<1x1xf32> -> vector<1x1xf32>
    %62 = vector.broadcast %61 : vector<1x1xf32> to vector<64x1xf32>
    %63 = arith.mulf %57, %62 : vector<64x1xf32>
    %64 = vector.broadcast %63 : vector<64x1xf32> to vector<64x128xf32>
    %65 = arith.mulf %38, %64 : vector<64x128xf32>
    %cst_26 = arith.constant dense<0.000000e+00> : vector<128xf32>
    %66 = vector.multi_reduction <add>, %65, %cst_26 [0] : vector<64x128xf32> to vector<128xf32>
    %67 = vector.shape_cast %66 : vector<128xf32> to vector<1x128xf32>
    %68 = arith.addf %33, %67 : vector<1x128xf32>
    %c1_27 = arith.constant 1 : index
    %c0_28 = arith.constant 0 : index
    %c0_29 = arith.constant 0 : index
    %69 = vector.load %arg4[%c1_27, %c0_28, %c0_29] : memref<2x64x128xf32, #tpu.memory_space<vmem>>, vector<1x64x128xf32>
    %70 = vector.shape_cast %69 : vector<1x64x128xf32> to vector<64x128xf32>
    %71 = vector.shape_cast %65 : vector<64x128xf32> to vector<1x64x128xf32>
    tpu.vector_store %arg4[%c1_27, %c0_28, %c0_29], %71 {strides = array<i32>} : memref<2x64x128xf32, #tpu.memory_space<vmem>>, vector<1x64x128xf32>,
    %cst_30 = arith.constant 7.812500e-03 : f32
    %72 = vector.broadcast %cst_30 : f32 to vector<1x128xf32>
    %73 = arith.mulf %68, %72 : vector<1x128xf32>
    %c0_31 = arith.constant 0 : index
    %c0_32 = arith.constant 0 : index
    %74 = vector.load %arg3[%c0_31, %c0_32] : memref<1x128xf32, #tpu.memory_space<vmem>>, vector<1x128xf32>
    tpu.vector_store %arg3[%c0_31, %c0_32], %73 {strides = array<i32>} : memref<1x128xf32, #tpu.memory_space<vmem>>, vector<1x128xf32>,
    %c0_33 = arith.constant 0 : index
    %c0_34 = arith.constant 0 : index
    %c0_35 = arith.constant 0 : index
    %75 = vector.load %arg4[%c0_33, %c0_34, %c0_35] : memref<2x64x128xf32, #tpu.memory_space<vmem>>, vector<2x64x128xf32>
    %c0_36 = arith.constant 0 : index
    %c0_37 = arith.constant 0 : index
    %c0_38 = arith.constant 0 : index
    %76 = vector.load %arg1[%c0_36, %c0_37, %c0_38] : memref<2x64x128xf32, #tpu.memory_space<vmem>>, vector<2x64x128xf32>
    %77 = vector.shape_cast %73 : vector<1x128xf32> to vector<1x1x128xf32>
    %78 = vector.broadcast %77 : vector<1x1x128xf32> to vector<2x64x128xf32>
    %79 = arith.mulf %76, %78 : vector<2x64x128xf32>
    %80 = arith.addf %75, %79 : vector<2x64x128xf32>
    %c0_39 = arith.constant 0 : index
    %c0_40 = arith.constant 0 : index
    %c0_41 = arith.constant 0 : index
    %81 = vector.load %arg4[%c0_39, %c0_40, %c0_41] : memref<2x64x128xf32, #tpu.memory_space<vmem>>, vector<2x64x128xf32>
    tpu.vector_store %arg4[%c0_39, %c0_40, %c0_41], %80 {strides = array<i32>} : memref<2x64x128xf32, #tpu.memory_space<vmem>>, vector<2x64x128xf32>,
    return
  }
  func.func @transform_0(%arg0: i32) -> (i32, i32, i32) {
    %c0_i32 = arith.constant 0 : i32
    %c0_i32_0 = arith.constant 0 : i32
    %c0_i32_1 = arith.constant 0 : i32
    %c0_i32_2 = arith.constant 0 : i32
    return %c0_i32, %c0_i32_0, %c0_i32_1 : i32, i32, i32
  }
  func.func @transform_1(%arg0: i32) -> (i32, i32) {
    %c0_i32 = arith.constant 0 : i32
    %c0_i32_0 = arith.constant 0 : i32
    %c0_i32_1 = arith.constant 0 : i32
    return %c0_i32, %c0_i32_0 : i32, i32
  }
  func.func @transform_2(%arg0: i32) -> (i32, i32) {
    %c0_i32 = arith.constant 0 : i32
    %c0_i32_0 = arith.constant 0 : i32
    %c0_i32_1 = arith.constant 0 : i32
    return %c0_i32, %c0_i32_0 : i32, i32
  }
  func.func @transform_3(%arg0: i32) -> (i32, i32, i32) {
    %c0_i32 = arith.constant 0 : i32
    %c0_i32_0 = arith.constant 0 : i32
    %c0_i32_1 = arith.constant 0 : i32
    %c0_i32_2 = arith.constant 0 : i32
    return %c0_i32, %c0_i32_0, %c0_i32_1 : i32, i32, i32
  }
}

module attributes {stable_mosaic.version = 11 : i64} {
  func.func @_attn_mask_seed_kernel(%arg0: i32, %arg1: memref<1x64x128xbf16, #tpu.memory_space<vmem>>, %arg2: memref<2x64x128xbf16, #tpu.memory_space<vmem>>, %arg3: memref<1x64x128xf32, #tpu.memory_space<vmem>>, %arg4: memref<1x1x64xf32, #tpu.memory_space<vmem>>, %arg5: memref<1x1x128xf32, #tpu.memory_space<vmem>>) attributes {dimension_semantics = [#tpu.dimension_semantics<parallel>], iteration_bounds = array<i64: 2>, scalar_prefetch = 0 : i64, scratch_operands = 0 : i64, tpu.core_type = #tpu.core_type<tc>, window_params = [{transform_indices = @transform_0, window_bounds = array<i64: 1, 64, 128>}, {pipeline_mode = #tpu.pipeline_mode<synchronous>, transform_indices = @transform_1, window_bounds = array<i64: 2, 64, 128>}, {transform_indices = @transform_2, window_bounds = array<i64: 1, 64, 128>}, {transform_indices = @transform_3, window_bounds = array<i64: 1, 1, 64>}, {transform_indices = @transform_4, window_bounds = array<i64: 1, 1, 128>}]} {
    %c0 = arith.constant 0 : index
    %c0_0 = arith.constant 0 : index
    %c0_1 = arith.constant 0 : index
    %0 = vector.load %arg1[%c0, %c0_0, %c0_1] : memref<1x64x128xbf16, #tpu.memory_space<vmem>>, vector<1x64x128xbf16>
    %1 = vector.shape_cast %0 : vector<1x64x128xbf16> to vector<64x128xbf16>
    %cst = arith.constant 0.000000e+00 : f32
    %2 = vector.broadcast %cst : f32 to vector<1x64xf32>
    %cst_2 = arith.constant 0xFF800000 : f32
    %3 = vector.broadcast %cst_2 : f32 to vector<1x64xf32>
    %c0_3 = arith.constant 0 : index
    %c0_4 = arith.constant 0 : index
    %c0_5 = arith.constant 0 : index
    %4 = vector.load %arg2[%c0_3, %c0_4, %c0_5] : memref<2x64x128xbf16, #tpu.memory_space<vmem>>, vector<1x64x128xbf16>
    %5 = vector.shape_cast %4 : vector<1x64x128xbf16> to vector<64x128xbf16>
    %cst_6 = arith.constant dense<0.000000e+00> : vector<64x64xf32>
    %6 = tpu.matmul %5, %1, %cst_6 {dimension_numbers = #tpu.dot_dimension_numbers<[1], [1], [0], [0], [0, 0, 1, 0], [], []>} : vector<64x128xbf16>, vector<64x128xbf16>, vector<64x64xf32> -> vector<64x64xf32>
    %cst_7 = arith.constant dense<0xFF800000> : vector<64xf32>
    %7 = vector.multi_reduction <maximumf>, %6, %cst_7 [0] : vector<64x64xf32> to vector<64xf32>
    %8 = vector.shape_cast %7 : vector<64xf32> to vector<1x64xf32>
    %9 = arith.maximumf %3, %8 : vector<1x64xf32>
    %10 = arith.addf %2, %9 : vector<1x64xf32>
    %cst_8 = arith.constant 0xFF800000 : f32
    %11 = vector.broadcast %cst_8 : f32 to vector<1x64xf32>
    %c1 = arith.constant 1 : index
    %c0_9 = arith.constant 0 : index
    %c0_10 = arith.constant 0 : index
    %12 = vector.load %arg2[%c1, %c0_9, %c0_10] : memref<2x64x128xbf16, #tpu.memory_space<vmem>>, vector<1x64x128xbf16>
    %13 = vector.shape_cast %12 : vector<1x64x128xbf16> to vector<64x128xbf16>
    %cst_11 = arith.constant dense<0.000000e+00> : vector<64x64xf32>
    %14 = tpu.matmul %13, %1, %cst_11 {dimension_numbers = #tpu.dot_dimension_numbers<[1], [1], [0], [0], [0, 0, 1, 0], [], []>} : vector<64x128xbf16>, vector<64x128xbf16>, vector<64x64xf32> -> vector<64x64xf32>
    %cst_12 = arith.constant dense<0xFF800000> : vector<64xf32>
    %15 = vector.multi_reduction <maximumf>, %14, %cst_12 [0] : vector<64x64xf32> to vector<64xf32>
    %16 = vector.shape_cast %15 : vector<64xf32> to vector<1x64xf32>
    %17 = arith.maximumf %11, %16 : vector<1x64xf32>
    %18 = arith.addf %10, %17 : vector<1x64xf32>
    %cst_13 = arith.constant 0.0441941731 : f32
    %19 = vector.broadcast %cst_13 : f32 to vector<1x64xf32>
    %20 = arith.mulf %18, %19 : vector<1x64xf32>
    %cst_14 = arith.constant dense<0xFF800000> : vector<1xf32>
    %21 = vector.multi_reduction <maximumf>, %20, %cst_14 [1] : vector<1x64xf32> to vector<1xf32>
    %22 = vector.shape_cast %21 : vector<1xf32> to vector<1x1xf32>
    %23 = vector.broadcast %22 : vector<1x1xf32> to vector<1x64xf32>
    %24 = arith.cmpf oeq, %20, %23 : vector<1x64xf32>
    %25 = arith.extui %24 : vector<1x64xi1> to vector<1x64xi32>
    %26 = arith.sitofp %25 : vector<1x64xi32> to vector<1x64xf32>
    %27 = vector.shape_cast %26 : vector<1x64xf32> to vector<1x1x64xf32>
    %c0_15 = arith.constant 0 : index
    %c0_16 = arith.constant 0 : index
    %c0_17 = arith.constant 0 : index
    %28 = vector.load %arg4[%c0_15, %c0_16, %c0_17] : memref<1x1x64xf32, #tpu.memory_space<vmem>>, vector<1x1x64xf32>
    tpu.vector_store %arg4[%c0_15, %c0_16, %c0_17], %27 {strides = array<i32>} : memref<1x1x64xf32, #tpu.memory_space<vmem>>, vector<1x1x64xf32>,
    %c0_18 = arith.constant 0 : index
    %c0_19 = arith.constant 0 : index
    %c0_20 = arith.constant 0 : index
    %29 = vector.load %arg3[%c0_18, %c0_19, %c0_20] : memref<1x64x128xf32, #tpu.memory_space<vmem>>, vector<1x64x128xf32>
    %30 = vector.shape_cast %29 : vector<1x64x128xf32> to vector<64x128xf32>
    %31 = arith.mulf %30, %30 : vector<64x128xf32>
    %cst_21 = arith.constant dense<0.000000e+00> : vector<64xf32>
    %32 = vector.multi_reduction <add>, %31, %cst_21 [1] : vector<64x128xf32> to vector<64xf32>
    %33 = vector.shape_cast %32 : vector<64xf32> to vector<64x1xf32>
    %cst_22 = arith.constant 1.000000e-24 : f32
    %34 = vector.broadcast %cst_22 : f32 to vector<64x1xf32>
    %35 = arith.maximumf %33, %34 : vector<64x1xf32>
    %36 = math.rsqrt %35 : vector<64x1xf32>
    %37 = vector.broadcast %36 : vector<64x1xf32> to vector<64x128xf32>
    %38 = arith.mulf %30, %37 : vector<64x128xf32>
    %cst_23 = arith.constant dense<0.000000e+00> : vector<1x128xf32>
    %39 = tpu.matmul %26, %38, %cst_23 {dimension_numbers = #tpu.dot_dimension_numbers<[1], [0], [0], [1], [0, 0, 1, 1], [], []>} : vector<1x64xf32>, vector<64x128xf32>, vector<1x128xf32> -> vector<1x128xf32>
    %40 = vector.shape_cast %39 : vector<1x128xf32> to vector<1x1x128xf32>
    %c0_24 = arith.constant 0 : index
    %c0_25 = arith.constant 0 : index
    %c0_26 = arith.constant 0 : index
    %41 = vector.load %arg5[%c0_24, %c0_25, %c0_26] : memref<1x1x128xf32, #tpu.memory_space<vmem>>, vector<1x1x128xf32>
    tpu.vector_store %arg5[%c0_24, %c0_25, %c0_26], %40 {strides = array<i32>} : memref<1x1x128xf32, #tpu.memory_space<vmem>>, vector<1x1x128xf32>,
    return
  }
  func.func @transform_0(%arg0: i32) -> (i32, i32, i32) {
    %c0_i32 = arith.constant 0 : i32
    %c0_i32_0 = arith.constant 0 : i32
    %c0_i32_1 = arith.constant 0 : i32
    return %arg0, %c0_i32, %c0_i32_0 : i32, i32, i32
  }
  func.func @transform_1(%arg0: i32) -> (i32, i32, i32) {
    %c0_i32 = arith.constant 0 : i32
    %c0_i32_0 = arith.constant 0 : i32
    %c0_i32_1 = arith.constant 0 : i32
    %c0_i32_2 = arith.constant 0 : i32
    return %c0_i32, %c0_i32_0, %c0_i32_1 : i32, i32, i32
  }
  func.func @transform_2(%arg0: i32) -> (i32, i32, i32) {
    %c0_i32 = arith.constant 0 : i32
    %c0_i32_0 = arith.constant 0 : i32
    %c0_i32_1 = arith.constant 0 : i32
    return %arg0, %c0_i32, %c0_i32_0 : i32, i32, i32
  }
  func.func @transform_3(%arg0: i32) -> (i32, i32, i32) {
    %c0_i32 = arith.constant 0 : i32
    %c0_i32_0 = arith.constant 0 : i32
    %c0_i32_1 = arith.constant 0 : i32
    return %arg0, %c0_i32, %c0_i32_0 : i32, i32, i32
  }
  func.func @transform_4(%arg0: i32) -> (i32, i32, i32) {
    %c0_i32 = arith.constant 0 : i32
    %c0_i32_0 = arith.constant 0 : i32
    %c0_i32_1 = arith.constant 0 : i32
    return %arg0, %c0_i32, %c0_i32_0 : i32, i32, i32
  }
}

</mosaic_0001>

<bundles_post_ra>
// kernel: att_layer_forward.4
= control target key start
LH: loop header
LB: loop body
LE: loop exit
PB: predicated region body
PF: predicated region fallthrough
CT: control target
= control target key end

     0   :  { %s917_s15 = smov 0   ;;  %s1042_s0 = inlined_call_operand.vmem [shape: bf16[2,64,128], index: 0, kind: input, shape index: {}]   ;;  %s1043_s1 = inlined_call_operand.vmem [shape: bf16[2,64,128], index: 1, kind: input, shape index: {}]   ;;  %s1044_s2 = inlined_call_operand.vmem [shape: f32[2,64,128], index: 2, kind: input, shape index: {}]   ;;  %s1045_s3 = inlined_call_operand.vmem [shape: f32[2,1,64], index: 3, kind: output, shape index: {0}]   ;;  %s1046_s4 = inlined_call_operand.vmem [shape: f32[2,1,128], index: 4, kind: output, shape index: {1}]  }
   0x1 LB: > { %s719_s16 = sadd.s32 4294967295, %s887_s15   ;;  %p723_p0 = scmp.ge.s32.totalorder %s887_s15, 1  ;;  %s887_s15 = sphi %s917_s15, %s15_s15  }
   0x2   : > { %p175_p1 = scmp.lt.s32.totalorder %s887_s15, 3 }
   0x4   : > { %p176_p2 = pnand %p723_p0, %p175_p1 }
   0x5   : > { %p207_p3 = scmp.lt.s32.totalorder (!%p176_p2), %s719_s16, 1  ;;  %v857_v0 = vld [vmem:[%s1043_s1] sm:$0xff] (!%p176_p2)   ;;  %v859_v8 = vld [vmem:[%s1043_s1 + $0x8] sm:$0xff] (!%p176_p2)   ;;  %v861_v10 = vld [vmem:[%s1043_s1 + $0x10] sm:$0xff] (!%p176_p2)   ;;  %v889_v28 = vmov (!%p176_p2), 0.0|0.0   ;;  %vm353_vm0 = vcmask (!%p176_p2), 523264  }
   0x6   : > { %179 = sbr.rel (%p176_p2) target bundleno = 653 (0x28d), region = 32  ;;  %v858_v1 = vld [vmem:[%s1043_s1 + $0x20] sm:$0xff] (!%p176_p2)   ;;  %787 = vmatprep.mubr.bf16.mxu0 (!%p176_p2), %v857_v0  ;;  %v860_v9 = vld [vmem:[%s1043_s1 + $0x28] sm:$0xff] (!%p176_p2)   ;;  %v862_v11 = vld [vmem:[%s1043_s1 + $0x30] sm:$0xff] (!%p176_p2)   ;;  %vm890_vm1 = vmmov (!%p176_p2), 0   ;;  %vm503_vm2 = vcmask (!%p176_p2), 516096  }
   0x7   : > { %803 = vmatprep.mubr.bf16.mxu1 (!%p176_p2), %v858_v1  ;;  %v863_v12 = vld [vmem:[%s1043_s1 + $0x18] sm:$0xff] (!%p176_p2)  }
   0x8   : > { %v864_v13 = vld [vmem:[%s1043_s1 + $0x38] sm:$0xff] (!%p176_p2)  }
   0xd   : > { %s1048_s16 = smov (!%p207_p3, %s719_s16), 1 }
   0xe   : > { %s752_s21 = sshll.u32 %s1048_s16, 5  ;;  %s753_s25 = sshll.u32 %s1048_s16, 6 }
   0xf   : > { %s211_s24 = scalar_lea.vmem %s1042_s0, %s752_s21  ;;  %s941_s28 = scalar_lea.vmem %s1044_s2, %s753_s25 }
  0x10   : > { %v853_v2 = vld [vmem:[%s211_s24] sm:$0xff]   ;;  %v854_v3 = vld [vmem:[%s211_s24 + $0x8] sm:$0xff]   ;;  %v855_v6 = vld [vmem:[%s211_s24 + $0x10] sm:$0xff]   ;;  %s219_s19 = scalar_lea.vmem %s1045_s3, %s1048_s16  ;;  %s222_s22 = scalar_lea.vmem %s1046_s4, %s1048_s16 }
  0x11   : > { %779 = vmatprep.subr.bf16.mxu0 %v853_v2  ;;  %795 = vmatprep.subr.bf16.mxu1 %v853_v2  ;;  %v944_v4 = vld [vmem:[%s941_s28] sm:$0xff]  ;;  %v856_v7 = vld [vmem:[%s211_s24 + $0x18] sm:$0xff]   ;;  %v967_v14 = vld [vmem:[%s941_s28 + $0x10] sm:$0xff] }
  0x12   : > { %780 = vmatpush3.bf16.xpose.msra.mxu0 %v853_v2  ;;  %796 = vmatpush3.bf16.xpose.msra.mxu1 %v853_v2  ;;  %v513_v5 = vmul.f32 %v944_v4, %v944_v4  ;;  %v970_v15 = vld [vmem:[%s941_s28 + $0x8] sm:$0xff]  ;;  %v515_v16 = vmul.f32 %v967_v14, %v967_v14  ;;  %v977_v18 = vld [vmem:[%s941_s28 + $0x18] sm:$0xff]  ;;  %v985_v21 = vld [vmem:[%s941_s28 + $0x20] sm:$0xff] }
  0x13   : > { %781 = vmatprep.subr.bf16.mxu0 %v854_v3  ;;  %797 = vmatprep.subr.bf16.mxu1 %v854_v3  ;;  %v514_v17 = vmul.f32 %v970_v15, %v970_v15  ;;  %v516_v19 = vmul.f32 %v977_v18, %v977_v18  ;;  %v982_v20 = vld [vmem:[%s941_s28 + $0x28] sm:$0xff]  ;;  %v517_v23 = vmul.f32 %v985_v21, %v985_v21  ;;  %v992_v24 = vld [vmem:[%s941_s28 + $0x38] sm:$0xff]  ;;  %v995_v25 = vld [vmem:[%s941_s28 + $0x30] sm:$0xff] }
  0x14   : > { %521 = vadd.xlane.f32.xlu0 %v513_v5  ;;  %525 = vadd.xlane.f32.xlu1 %v515_v16  ;;  %v518_v22 = vmul.f32 %v982_v20, %v982_v20  ;;  %v520_v26 = vmul.f32 %v992_v24, %v992_v24  ;;  %v519_v27 = vmul.f32 %v995_v25, %v995_v25 }
  0x18   : > { %523 = vadd.xlane.f32.xlu0 %v514_v17  ;;  %527 = vadd.xlane.f32.xlu1 %v516_v19 }
  0x1a   : > { %782 = vmatpush3.bf16.xpose.msra.mxu0 %v854_v3  ;;  %798 = vmatpush3.bf16.xpose.msra.mxu1 %v854_v3 }
  0x1b   : > { %783 = vmatprep.subr.bf16.mxu0 %v855_v6  ;;  %799 = vmatprep.subr.bf16.mxu1 %v855_v6 }
  0x1c   : > { %531 = vadd.xlane.f32.xlu1 %v518_v22  ;;  %529 = vadd.xlane.f32.xlu0 %v517_v23 }
  0x20   : > { %535 = vadd.xlane.f32.xlu1 %v520_v26  ;;  %533 = vadd.xlane.f32.xlu0 %v519_v27 }
  0x22   : > { %784 = vmatpush3.bf16.xpose.msra.mxu0 %v855_v6  ;;  %800 = vmatpush3.bf16.xpose.msra.mxu1 %v855_v6 }
  0x23   : > { %785 = vmatprep.subr.bf16.mxu0 %v856_v7  ;;  %801 = vmatprep.subr.bf16.mxu1 %v856_v7 }
  0x2a   : > { %786 = vmatpush3.bf16.xpose.msra.mxu0 %v856_v7  ;;  %802 = vmatpush3.bf16.xpose.msra.mxu1 %v856_v7 }
  0x2b   : > { %830 = vmatprep.subr.bf16.mxu0 %v889_v28 }
  0x31   : > { %788 = vmatmul.mubr.bf16.vlgmr.msra.gmra.mrb[0].mxu0 %v859_v8  ;;  %804 = vmatmul.mubr.bf16.vlgmr.msra.gmra.mrb[0].mxu1 %v860_v9 }
  0x32   : > { %791 = vmatprep.mubr.bf16.mxu0 %v861_v10  ;;  %807 = vmatprep.mubr.bf16.mxu1 %v862_v11 }
  0x39   : > { %792 = vmatmul.mubr.bf16.gmra.mrb[4].mxu0 %v863_v12  ;;  %808 = vmatmul.mubr.bf16.gmra.mrb[4].mxu1 %v864_v13 }
  0xa1   : > { %v522_v37 = vpop.xlane.xlu0 %521  ;;  %v526_v12 = vpop.xlane.xlu1 %525 }
  0xa2   : > { %v537_v40 = vmax.f32 %v522_v37, 1e-24  ;;  %v539_v16 = vmax.f32 %v526_v12, 1e-24 }
  0xa4   : > { %865 = vrsqrt.f32 %v537_v40 }
  0xa5   : > { %v524_v13 = vpop.xlane.xlu0 %523  ;;  %867 = vrsqrt.f32 %v539_v16  ;;  %v528_v27 = vpop.xlane.xlu1 %527 }
  0xa6   : > { %v538_v17 = vmax.f32 %v524_v13, 1e-24 }
  0xa8   : > { %869 = vrsqrt.f32 %v538_v17 }
  0xa9   : > { %v530_v40 = vpop.xlane.xlu0 %529 }
 0x104   : > { %v789_v29 = vpop.f32.mrb[0].mxu0  ;;  %v805_v30 = vpop.f32.mrb[0].mxu1 }
 0x105   : > { %v322_v31 = vpop.f32.mrb[1].mxu0  ;;  %v443_v32 = vpop.f32.mrb[1].mxu1  ;;  %v356_v38 = vsel %vm353_vm0, %v789_v29, -inf  ;;  %v476_v39 = vsel %vm353_vm0, %v805_v30, -inf  ;;  %v540_v29 = vmax.f32 %v528_v27, 1e-24 }
 0x106   : > { %v790_v33 = vpop.f32.mrb[2].mxu0  ;;  %v806_v34 = vpop.f32.mrb[2].mxu1  ;;  %v354_v41 = vsel %vm353_vm0, %v322_v31, -inf  ;;  %v474_v42 = vsel %vm353_vm0, %v443_v32, -inf }
 0x107   : > { %v325_v35 = vpop.f32.mrb[3].mxu0  ;;  %v446_v36 = vpop.f32.mrb[3].mxu1  ;;  %v357_v43 = vsel %vm353_vm0, %v790_v33, -inf  ;;  %v477_v44 = vsel %vm353_vm0, %v806_v34, -inf  ;;  %871 = vrsqrt.f32 %v540_v29 }
 0x108   : > { %v355_v47 = vsel %vm353_vm0, %v325_v35, -inf  ;;  %v475_v48 = vsel %vm353_vm0, %v446_v36, -inf  ;;  %v866_v34 = vpop.eup %865 }
 0x10c   : > { %v793_v45 = vpop.f32.mrb[4].mxu0  ;;  %v809_v46 = vpop.f32.mrb[4].mxu1 }
 0x10d   : > { %v362_v49 = vsel %vm353_vm0, %v793_v45, -inf  ;;  %v482_v50 = vsel %vm353_vm0, %v809_v46, -inf  ;;  %v338_v51 = vpop.f32.mrb[5].mxu0  ;;  %v459_v52 = vpop.f32.mrb[5].mxu1 }
 0x10e   : > { %v363_v53 = vmax.f32 %v356_v38, %v362_v49  ;;  %v483_v54 = vmax.f32 %v476_v39, %v482_v50  ;;  %v358_v55 = vsel %vm353_vm0, %v338_v51, -inf  ;;  %v478_v56 = vsel %vm353_vm0, %v459_v52, -inf  ;;  %v794_v57 = vpop.f32.mrb[6].mxu0  ;;  %v810_v58 = vpop.f32.mrb[6].mxu1 }
 0x10f   : > { %v359_v59 = vmax.f32 %v354_v41, %v358_v55  ;;  %v479_v60 = vmax.f32 %v474_v42, %v478_v56  ;;  %v364_v61 = vsel %vm353_vm0, %v794_v57, -inf  ;;  %v484_v62 = vsel %vm353_vm0, %v810_v58, -inf  ;;  %v341_v63 = vpop.f32.mrb[7].mxu0  ;;  %v462_v0 = vpop.f32.mrb[7].mxu1 }
 0x110   : > { %v365_v1 = vmax.f32 %v357_v43, %v364_v61  ;;  %v485_v2 = vmax.f32 %v477_v44, %v484_v62  ;;  %v360_v3 = vsel %vm353_vm0, %v341_v63, -inf  ;;  %v480_v5 = vsel %vm353_vm0, %v462_v0, -inf  ;;  %v532_v39 = vpop.xlane.xlu1 %531  ;;  %v868_v41 = vpop.eup %867 }
 0x111   : > { %v361_v6 = vmax.f32 %v355_v47, %v360_v3  ;;  %v481_v7 = vmax.f32 %v475_v48, %v480_v5  ;;  %v542_v42 = vmax.f32 %v532_v39, 1e-24  ;;  %v541_v43 = vmax.f32 %v530_v40, 1e-24  ;;  %v870_v45 = vpop.eup %869  ;;  %v534_v51 = vpop.xlane.xlu0 %533 }
 0x112   : > { %v367_v8 = vmax.f32 %v363_v53, %v365_v1  ;;  %v487_v9 = vmax.f32 %v483_v54, %v485_v2  ;;  %v553_v44 = vmul.f32 %v866_v34, %v944_v4  ;;  %v554_v48 = vmul.f32 %v870_v45, %v970_v15  ;;  %v872_v53 = vpop.eup %871 }
 0x113   : > { %v366_v10 = vmax.f32 %v359_v59, %v361_v6  ;;  %v486_v11 = vmax.f32 %v479_v60, %v481_v7  ;;  %873 = vrsqrt.f32 %v542_v42  ;;  %v555_v52 = vmul.f32 %v868_v41, %v967_v14 }
 0x114   : > { %875 = vrsqrt.f32 %v541_v43  ;;  %v536_v50 = vpop.xlane.xlu1 %535  ;;  %v543_v55 = vmax.f32 %v534_v51, 1e-24  ;;  %v831_v56 = vpack.c.bf16 %v554_v48, %v553_v44  ;;  %v556_v58 = vmul.f32 %v872_v53, %v977_v18 }
 0x115   : > { %v368_v19 = vmax.f32 %v366_v10, %v367_v8  ;;  %v488_v22 = vmax.f32 %v486_v11, %v487_v9  ;;  %v544_v54 = vmax.f32 %v536_v50, 1e-24  ;;  %v891_v3 = vmov 0.0  }
 0x116   : > { %832 = vmatpush3.bf16.msra.mxu0 %v831_v56  ;;  %v834_v15 = vpack.c.bf16 %v556_v58, %v555_v52  ;;  %827 = vmatprep.mubr.msk.f32.mxu0 %vm890_vm1, %v891_v3 }
 0x117   : > { %v369_v23 = vrot.slane %v368_v19, 4  ;;  %v489_v26 = vrot.slane %v488_v22, 4  ;;  %877 = vrsqrt.f32 %v544_v54  ;;  %833 = vmatprep.subr.bf16.mxu0 %v889_v28 }
 0x118   : > { %879 = vrsqrt.f32 %v543_v55 }
 0x119   : > { %v370_v30 = vmax.f32 %v368_v19, %v369_v23  ;;  %v490_v31 = vmax.f32 %v488_v22, %v489_v26 }
 0x11a   : > { %835 = vmatpush3.bf16.msra.mxu0 %v834_v15 }
 0x11b   : > { %v371_v32 = vrot.slane %v370_v30, 2  ;;  %v491_v33 = vrot.slane %v490_v31, 2  ;;  %836 = vmatprep.subr.bf16.mxu0 %v889_v28 }
 0x11d   : > { %v372_v35 = vmax.f32 %v370_v30, %v371_v32  ;;  %v492_v36 = vmax.f32 %v490_v31, %v491_v33  ;;  %v874_v14 = vpop.eup %873 }
 0x11e   : > { %v876_v59 = vpop.eup %875  ;;  %v558_v60 = vmul.f32 %v874_v14, %v982_v20 }
 0x11f   : > { %v373_v37 = vrot.slane %v372_v35, 1  ;;  %v493_v38 = vrot.slane %v492_v36, 1  ;;  %v557_v61 = vmul.f32 %v876_v59, %v985_v21 }
 0x121   : > { %v374_v46 = vmax.f32 %v372_v35, %v373_v37  ;;  %v494_v47 = vmax.f32 %v492_v36, %v493_v38  ;;  %v878_v18 = vpop.eup %877  ;;  %v837_v62 = vpack.c.bf16 %v558_v60, %v557_v61 }
 0x122   : > { %v880_v63 = vpop.eup %879  ;;  %v560_v0 = vmul.f32 %v878_v18, %v992_v24 }
 0x123   : > { %v495_v49 = vadd.f32 %v494_v47, %v374_v46  ;;  %838 = vmatpush3.bf16.msra.mxu0 %v837_v62  ;;  %v559_v1 = vmul.f32 %v880_v63, %v995_v25 }
 0x124   : > { %839 = vmatprep.subr.bf16.mxu0 %v889_v28 }
 0x125   : > { %v496_v57 = vmul.f32 0.044194173, %v495_v49  ;;  %v840_v2 = vpack.c.bf16 %v560_v0, %v559_v1 }
 0x127   : > { %v497_v4 = vsel %vm353_vm0, %v496_v57, -inf  ;;  %841 = vmatpush3.bf16.msra.mxu0 %v840_v2 }
 0x128   : > { %498 = vmax.xlane.f32.xlu0 %v497_v4 }
 0x1b5   : > { %v499_v20 = vpop.xlane.xlu0 %498 }
 0x1b6   : > { %vm500_vm3 = vcmp.eq.f32.partialorder %v496_v57, %v499_v20 }
 0x1b7   : > { %v748_v21 = vsel %vm500_vm3, 1.0, %v891_v3 }
 0x1b8   : > { %504 = vst.msk [vmem:[%s219_s19] sm:$0x1] %vm503_vm2, %v748_v21  ;;  %828 = vmatmul.mubr.msk.f32.vlgmr.msra.gmra.mrb[8].mxu0 %vm353_vm0, %v748_v21 }
 0x28b   : > { %v630_v24 = vpop.f32.mrb[8].mxu0 }
 0x28c   : > { %634 = vst [vmem:[%s222_s22] sm:$0x1] %v630_v24  ;;  %v829_v25 = vpop.f32.mrb[9].mxu0 }
 0x28d PF: > { %s15_s15 = sadd.s32 1, %s887_s15  }
 0x28e   : > { %p12_p4 = scmp.ge.s32.totalorder %s15_s15, 4  }
 0x290   :  { %14 = sbr.rel (!%p12_p4) target bundleno = 1 (0x1), region = 78 }

// kernel: att_layer_forward.5
= control target key start
LH: loop header
LB: loop body
LE: loop exit
PB: predicated region body
PF: predicated region fallthrough
CT: control target
= control target key end

     0   :  { %9 = vsyncpa [#allocation3], 0  ;;  %s1179_s0 = inlined_call_operand.vmem [shape: f32[2,64,128], index: 0, kind: input, shape index: {}]   ;;  %s1180_s1 = inlined_call_operand.vmem [shape: f32[2,128], index: 1, kind: input, shape index: {}]   ;;  %s1181_s2 = inlined_call_operand.hbm [shape: f32[1,128], index: 2, kind: output, shape index: {0}]   ;;  %s1182_s3 = inlined_call_operand.hbm [shape: f32[2,64,128], index: 3, kind: output, shape index: {1}]  }
   0x1   :  { %v837_v0 = vld [vmem:[%s1179_s0] sm:$0xff]  ;;  %v842_v1 = vld [vmem:[%s1179_s0 + $0x8] sm:$0xff]  ;;  %v865_v8 = vld [vmem:[%s1179_s0 + $0x10] sm:$0xff] }
   0x2   :  { %v847_v2 = vld [vmem:[%s1179_s0 + $0x40] sm:$0xff]  ;;  %v24_v3 = vmul.f32 %v837_v0, %v837_v0  ;;  %v25_v4 = vmul.f32 %v842_v1, %v842_v1  ;;  %v856_v5 = vld [vmem:[%s1179_s0 + $0x48] sm:$0xff]  ;;  %v870_v9 = vld [vmem:[%s1179_s0 + $0x50] sm:$0xff] }
   0x3   :  { %v295_v6 = vmul.f32 %v847_v2, %v847_v2  ;;  %v296_v7 = vmul.f32 %v856_v5, %v856_v5 }
   0x4   :  { %32 = vadd.xlane.f32.xlu0 %v24_v3  ;;  %34 = vadd.xlane.f32.xlu1 %v25_v4 }
   0x5   :  { %10 = vsyncpa [#allocation5], 0  ;;  %v26_v10 = vmul.f32 %v865_v8, %v865_v8  ;;  %v297_v11 = vmul.f32 %v870_v9, %v870_v9  ;;  %v879_v12 = vld [vmem:[%s1179_s0 + $0x18] sm:$0xff]  ;;  %v893_v16 = vld [vmem:[%s1179_s0 + $0x20] sm:$0xff]  ;;  %vm177_vm0 = vcmask 15360  }
   0x6   :  { %v884_v13 = vld [vmem:[%s1179_s0 + $0x58] sm:$0xff]  ;;  %v27_v14 = vmul.f32 %v879_v12, %v879_v12  ;;  %v898_v17 = vld [vmem:[%s1179_s0 + $0x60] sm:$0xff]  ;;  %v28_v18 = vmul.f32 %v893_v16, %v893_v16  ;;  %v907_v20 = vld [vmem:[%s1179_s0 + $0x28] sm:$0xff] }
   0x7   :  { %v298_v15 = vmul.f32 %v884_v13, %v884_v13  ;;  %v299_v19 = vmul.f32 %v898_v17, %v898_v17  ;;  %v912_v21 = vld [vmem:[%s1179_s0 + $0x68] sm:$0xff]  ;;  %v29_v22 = vmul.f32 %v907_v20, %v907_v20  ;;  %v921_v24 = vld [vmem:[%s1179_s0 + $0x30] sm:$0xff]  ;;  %v935_v28 = vld [vmem:[%s1179_s0 + $0x38] sm:$0xff] }
   0x8   :  { %303 = vadd.xlane.f32.xlu0 %v295_v6  ;;  %305 = vadd.xlane.f32.xlu1 %v296_v7  ;;  %v300_v23 = vmul.f32 %v912_v21, %v912_v21  ;;  %v926_v25 = vld [vmem:[%s1179_s0 + $0x70] sm:$0xff]  ;;  %v30_v26 = vmul.f32 %v921_v24, %v921_v24  ;;  %v940_v29 = vld [vmem:[%s1179_s0 + $0x78] sm:$0xff]  ;;  %v31_v30 = vmul.f32 %v935_v28, %v935_v28  ;;  %v15_v32 = vld [vmem:[%s1180_s1] sm:$0x3]  ;;  %s810_s0 = smov [#allocation2]  }
   0x9   :  { %v301_v27 = vmul.f32 %v926_v25, %v926_v25  ;;  %v302_v31 = vmul.f32 %v940_v29, %v940_v29  ;;  %694 = vmatprep.subr.mxu0 %v15_v32  ;;  %708 = vmatprep.subr.mxu1 %v15_v32  ;;  %s644_s1 = sshll.u32 %s810_s0, 4  ;;  %s645_s1 = int_to_ptr.vmem [resolvable:$true] %s644_s1 }
   0xa   :  { %695 = vmatpush3.xpose.msra.mxu0 %v15_v32  ;;  %709 = vmatpush3.xpose.msra.mxu1 %v15_v32  ;;  %s762_s19 = scalar_lea.vmem %s645_s1, 16  ;;  %s766_s20 = scalar_lea.vmem %s645_s1, 32 }
   0xb   :  { %p763_p0 = scmp.ne.s32.totalorder %s645_s1, %s762_s19  ;;  %p767_p1 = scmp.lt.s32.totalorder %s645_s1, %s645_s1 }
   0xc   :  { %36 = vadd.xlane.f32.xlu0 %v26_v10  ;;  %307 = vadd.xlane.f32.xlu1 %v297_v11  ;;  %p768_p2 = scmp.lt.s32.totalorder %s766_s20, %s762_s19 }
   0xe   :  { %p769_p3 = por %p768_p2, %p767_p1 }
  0x10   :  { %38 = vadd.xlane.f32.xlu0 %v27_v14  ;;  %309 = vadd.xlane.f32.xlu1 %v298_v15  ;;  %p770_p4 = pnand %p769_p3, %p763_p0 }
  0x14   :  { %40 = vadd.xlane.f32.xlu0 %v28_v18  ;;  %311 = vadd.xlane.f32.xlu1 %v299_v19 }
  0x18   :  { %42 = vadd.xlane.f32.xlu0 %v29_v22  ;;  %313 = vadd.xlane.f32.xlu1 %v300_v23 }
  0x1c   :  { %44 = vadd.xlane.f32.xlu0 %v30_v26  ;;  %315 = vadd.xlane.f32.xlu1 %v301_v27 }
  0x20   :  { %46 = vadd.xlane.f32.xlu0 %v31_v30  ;;  %317 = vadd.xlane.f32.xlu1 %v302_v31 }
  0x91   :  { %v33_v33 = vpop.xlane.xlu0 %32  ;;  %v35_v34 = vpop.xlane.xlu1 %34 }
  0x92   :  { %v48_v35 = vmax.f32 %v33_v33, 1e-24  ;;  %v49_v36 = vmax.f32 %v35_v34, 1e-24 }
  0x94   :  { %726 = vrsqrt.f32 %v48_v35 }
  0x95   :  { %728 = vrsqrt.f32 %v49_v36  ;;  %v304_v37 = vpop.xlane.xlu0 %303  ;;  %v306_v38 = vpop.xlane.xlu1 %305 }
  0x96   :  { %v319_v39 = vmax.f32 %v304_v37, 1e-24  ;;  %v320_v40 = vmax.f32 %v306_v38, 1e-24 }
  0x98   :  { %730 = vrsqrt.f32 %v319_v39 }
  0x99   :  { %732 = vrsqrt.f32 %v320_v40  ;;  %v37_v41 = vpop.xlane.xlu0 %36  ;;  %v308_v42 = vpop.xlane.xlu1 %307 }
  0x9a   :  { %v50_v43 = vmax.f32 %v37_v41, 1e-24  ;;  %v321_v44 = vmax.f32 %v308_v42, 1e-24 }
  0x9c   :  { %734 = vrsqrt.f32 %v50_v43 }
  0x9d   :  { %736 = vrsqrt.f32 %v321_v44  ;;  %v39_v45 = vpop.xlane.xlu0 %38  ;;  %v310_v46 = vpop.xlane.xlu1 %309 }
  0x9e   :  { %v727_v47 = vpop.eup %726  ;;  %v51_v48 = vmax.f32 %v39_v45, 1e-24  ;;  %v322_v49 = vmax.f32 %v310_v46, 1e-24 }
  0x9f   :  { %v729_v50 = vpop.eup %728  ;;  %v64_v51 = vmul.f32 %v727_v47, %v837_v0 }
  0xa0   :  { %738 = vrsqrt.f32 %v51_v48  ;;  %v65_v52 = vmul.f32 %v729_v50, %v842_v1 }
  0xa1   :  { %740 = vrsqrt.f32 %v322_v49  ;;  %696 = vmatprep.mubr.f32.mxu0 %v64_v51  ;;  %v41_v53 = vpop.xlane.xlu0 %40  ;;  %v312_v54 = vpop.xlane.xlu1 %311 }
  0xa2   :  { %v731_v55 = vpop.eup %730  ;;  %v52_v56 = vmax.f32 %v41_v53, 1e-24  ;;  %v323_v57 = vmax.f32 %v312_v54, 1e-24  ;;  %697 = vmatmul.mubr.f32.vlgmr.msra.gmra.mrb[0].mxu0 %v65_v52 }
  0xa3   :  { %v733_v58 = vpop.eup %732  ;;  %v335_v59 = vmul.f32 %v731_v55, %v847_v2 }
  0xa4   :  { %742 = vrsqrt.f32 %v52_v56  ;;  %v336_v60 = vmul.f32 %v733_v58, %v856_v5 }
  0xa5   :  { %744 = vrsqrt.f32 %v323_v57  ;;  %710 = vmatprep.mubr.f32.mxu1 %v335_v59  ;;  %v43_v61 = vpop.xlane.xlu0 %42  ;;  %v314_v62 = vpop.xlane.xlu1 %313 }
  0xa6   :  { %v735_v63 = vpop.eup %734  ;;  %v53_v3 = vmax.f32 %v43_v61, 1e-24  ;;  %v324_v4 = vmax.f32 %v314_v62, 1e-24  ;;  %711 = vmatmul.mubr.f32.vlgmr.msra.gmra.mrb[0].mxu1 %v336_v60 }
  0xa7   :  { %v737_v6 = vpop.eup %736  ;;  %v66_v7 = vmul.f32 %v735_v63, %v865_v8 }
  0xa8   :  { %746 = vrsqrt.f32 %v53_v3  ;;  %v337_v10 = vmul.f32 %v737_v6, %v870_v9 }
  0xa9   :  { %748 = vrsqrt.f32 %v324_v4  ;;  %v45_v11 = vpop.xlane.xlu0 %44  ;;  %699 = vmatprep.mubr.f32.mxu0 %v66_v7  ;;  %v316_v14 = vpop.xlane.xlu1 %315 }
  0xaa   :  { %v739_v15 = vpop.eup %738  ;;  %v54_v18 = vmax.f32 %v45_v11, 1e-24  ;;  %v325_v19 = vmax.f32 %v316_v14, 1e-24  ;;  %713 = vmatprep.mubr.f32.mxu1 %v337_v10 }
  0xab   :  { %v741_v22 = vpop.eup %740  ;;  %v67_v23 = vmul.f32 %v739_v15, %v879_v12 }
  0xac   :  { %750 = vrsqrt.f32 %v54_v18  ;;  %v338_v26 = vmul.f32 %v741_v22, %v884_v13 }
  0xad   :  { %752 = vrsqrt.f32 %v325_v19  ;;  %v47_v27 = vpop.xlane.xlu0 %46  ;;  %700 = vmatmul.mubr.f32.gmra.mrb[2].mxu0 %v67_v23  ;;  %v318_v30 = vpop.xlane.xlu1 %317 }
  0xae   :  { %v743_v31 = vpop.eup %742  ;;  %v55_v32 = vmax.f32 %v47_v27, 1e-24  ;;  %v326_v33 = vmax.f32 %v318_v30, 1e-24  ;;  %714 = vmatmul.mubr.f32.gmra.mrb[2].mxu1 %v338_v26 }
  0xaf   :  { %v745_v34 = vpop.eup %744  ;;  %v68_v35 = vmul.f32 %v743_v31, %v893_v16 }
  0xb0   :  { %754 = vrsqrt.f32 %v55_v32  ;;  %v339_v36 = vmul.f32 %v745_v34, %v898_v17 }
  0xb1   :  { %756 = vrsqrt.f32 %v326_v33  ;;  %702 = vmatprep.mubr.f32.mxu0 %v68_v35 }
  0xb2   :  { %v747_v37 = vpop.eup %746  ;;  %716 = vmatprep.mubr.f32.mxu1 %v339_v36 }
  0xb3   :  { %v749_v38 = vpop.eup %748  ;;  %v69_v39 = vmul.f32 %v747_v37, %v907_v20 }
  0xb4   :  { %v340_v40 = vmul.f32 %v749_v38, %v912_v21 }
  0xb5   :  { %703 = vmatmul.mubr.f32.gmra.mrb[4].mxu0 %v69_v39 }
  0xb6   :  { %v751_v41 = vpop.eup %750  ;;  %717 = vmatmul.mubr.f32.gmra.mrb[4].mxu1 %v340_v40 }
  0xb7   :  { %v753_v42 = vpop.eup %752  ;;  %v70_v43 = vmul.f32 %v751_v41, %v921_v24 }
  0xb8   :  { %v341_v44 = vmul.f32 %v753_v42, %v926_v25 }
  0xb9   :  { %705 = vmatprep.mubr.f32.mxu0 %v70_v43 }
  0xba   :  { %v755_v45 = vpop.eup %754  ;;  %719 = vmatprep.mubr.f32.mxu1 %v341_v44 }
  0xbb   :  { %v757_v46 = vpop.eup %756  ;;  %v71_v47 = vmul.f32 %v755_v45, %v935_v28 }
  0xbc   :  { %v342_v48 = vmul.f32 %v757_v46, %v940_v29 }
  0xbd   :  { %706 = vmatmul.mubr.f32.gmra.mrb[6].mxu0 %v71_v47 }
  0xbe   :  { %720 = vmatmul.mubr.f32.gmra.mrb[6].mxu1 %v342_v48 }
 0x175   :  { %v698_v49 = vpop.f32.mrb[0].mxu0 }
 0x176   :  { %v138_v50 = vpop.f32.mrb[1].mxu0  ;;  %v181_v51 = vsel %vm177_vm0, %v698_v49, 0.0 }
 0x177   :  { %182 = vadd.xlane.f32.xlu1 %v181_v51  ;;  %v178_v52 = vsel %vm177_vm0, %v138_v50, 0.0 }
 0x178   :  { %179 = vadd.xlane.f32.xlu0 %v178_v52 }
 0x179   :  { %v712_v53 = vpop.f32.mrb[0].mxu1 }
 0x17a   :  { %v409_v54 = vpop.f32.mrb[1].mxu1  ;;  %v451_v55 = vsel %vm177_vm0, %v712_v53, 0.0 }
 0x17b   :  { %452 = vadd.xlane.f32.xlu1 %v451_v55  ;;  %v448_v56 = vsel %vm177_vm0, %v409_v54, 0.0 }
 0x17c   :  { %449 = vadd.xlane.f32.xlu0 %v448_v56 }
 0x180   :  { %v701_v57 = vpop.f32.mrb[2].mxu0 }
 0x181   :  { %v148_v58 = vpop.f32.mrb[3].mxu0  ;;  %v187_v59 = vsel %vm177_vm0, %v701_v57, 0.0  ;;  %v715_v60 = vpop.f32.mrb[2].mxu1 }
 0x182   :  { %188 = vadd.xlane.f32.xlu1 %v187_v59  ;;  %v184_v61 = vsel %vm177_vm0, %v148_v58, 0.0  ;;  %v419_v62 = vpop.f32.mrb[3].mxu1  ;;  %v457_v63 = vsel %vm177_vm0, %v715_v60, 0.0 }
 0x183   :  { %185 = vadd.xlane.f32.xlu0 %v184_v61  ;;  %v454_v3 = vsel %vm177_vm0, %v419_v62, 0.0 }
 0x186   :  { %458 = vadd.xlane.f32.xlu1 %v457_v63 }
 0x187   :  { %455 = vadd.xlane.f32.xlu0 %v454_v3 }
 0x188   :  { %v704_v4 = vpop.f32.mrb[4].mxu0 }
 0x189   :  { %v158_v6 = vpop.f32.mrb[5].mxu0  ;;  %v193_v7 = vsel %vm177_vm0, %v704_v4, 0.0  ;;  %v718_v10 = vpop.f32.mrb[4].mxu1 }
 0x18a   :  { %194 = vadd.xlane.f32.xlu1 %v193_v7  ;;  %v190_v11 = vsel %vm177_vm0, %v158_v6, 0.0  ;;  %v429_v14 = vpop.f32.mrb[5].mxu1  ;;  %v463_v15 = vsel %vm177_vm0, %v718_v10, 0.0 }
 0x18b   :  { %191 = vadd.xlane.f32.xlu0 %v190_v11  ;;  %v460_v18 = vsel %vm177_vm0, %v429_v14, 0.0 }
 0x18e   :  { %464 = vadd.xlane.f32.xlu1 %v463_v15 }
 0x18f   :  { %461 = vadd.xlane.f32.xlu0 %v460_v18 }
 0x190   :  { %v707_v19 = vpop.f32.mrb[6].mxu0 }
 0x191   :  { %v168_v22 = vpop.f32.mrb[7].mxu0  ;;  %v199_v23 = vsel %vm177_vm0, %v707_v19, 0.0  ;;  %v721_v26 = vpop.f32.mrb[6].mxu1 }
 0x192   :  { %200 = vadd.xlane.f32.xlu1 %v199_v23  ;;  %v196_v27 = vsel %vm177_vm0, %v168_v22, 0.0  ;;  %v439_v30 = vpop.f32.mrb[7].mxu1  ;;  %v469_v31 = vsel %vm177_vm0, %v721_v26, 0.0 }
 0x193   :  { %197 = vadd.xlane.f32.xlu0 %v196_v27  ;;  %v466_v32 = vsel %vm177_vm0, %v439_v30, 0.0 }
 0x196   :  { %470 = vadd.xlane.f32.xlu1 %v469_v31 }
 0x197   :  { %467 = vadd.xlane.f32.xlu0 %v466_v32 }
 0x204   :  { %v183_v33 = vpop.xlane.xlu1 %182 }
 0x205   :  { %v180_v34 = vpop.xlane.xlu0 %179  ;;  %v985_v47 = vmul.f32 0.5, %v183_v33 }
 0x206   :  { %v987_v48 = vmul.f32 0.5, %v180_v34 }
 0x208   :  { %v453_v35 = vpop.xlane.xlu1 %452 }
 0x209   :  { %v450_v36 = vpop.xlane.xlu0 %449  ;;  %v989_v49 = vmul.f32 0.5, %v453_v35 }
 0x20a   :  { %v997_v54 = vmul.f32 0.5, %v450_v36 }
 0x20f   :  { %v189_v37 = vpop.xlane.xlu1 %188 }
 0x210   :  { %v186_v38 = vpop.xlane.xlu0 %185  ;;  %v999_v55 = vmul.f32 0.5, %v189_v37 }
 0x211   :  { %v1005_v59 = vmul.f32 0.5, %v186_v38 }
 0x213   :  { %v459_v39 = vpop.xlane.xlu1 %458 }
 0x214   :  { %v456_v40 = vpop.xlane.xlu0 %455  ;;  %v1013_v63 = vmul.f32 0.5, %v459_v39 }
 0x215   :  { %v1015_v3 = vmul.f32 0.5, %v456_v40 }
 0x217   :  { %v195_v41 = vpop.xlane.xlu1 %194 }
 0x218   :  { %v192_v42 = vpop.xlane.xlu0 %191  ;;  %v981_v43 = vmul.f32 0.5, %v195_v41 }
 0x219   :  { %v983_v44 = vmul.f32 0.5, %v192_v42 }
 0x21a   :  { %v212_v50 = vmin.f32 %v985_v47, %v981_v43  ;;  %v225_v60 = vmax.f32 %v985_v47, %v981_v43 }
 0x21b   :  { %v465_v45 = vpop.xlane.xlu1 %464  ;;  %v211_v51 = vmin.f32 %v987_v48, %v983_v44  ;;  %v224_v61 = vmax.f32 %v987_v48, %v983_v44 }
 0x21c   :  { %v462_v46 = vpop.xlane.xlu0 %461  ;;  %v995_v52 = vmul.f32 0.5, %v465_v45 }
 0x21d   :  { %v1001_v56 = vmul.f32 0.5, %v462_v46  ;;  %v215_v7 = vmin.f32 %v211_v51, %v212_v50  ;;  %v228_v27 = vmax.f32 %v224_v61, %v225_v60 }
 0x21e   :  { %v481_v10 = vmin.f32 %v989_v49, %v995_v52  ;;  %v494_v18 = vmax.f32 %v989_v49, %v995_v52 }
 0x21f   :  { %v201_v53 = vpop.xlane.xlu1 %200  ;;  %v480_v19 = vmin.f32 %v997_v54, %v1001_v56  ;;  %v493_v22 = vmax.f32 %v997_v54, %v1001_v56 }
 0x220   :  { %v1003_v57 = vmul.f32 0.5, %v201_v53  ;;  %v198_v58 = vpop.xlane.xlu0 %197 }
 0x221   :  { %v1011_v62 = vmul.f32 0.5, %v198_v58  ;;  %v484_v39 = vmin.f32 %v480_v19, %v481_v10  ;;  %v497_v40 = vmax.f32 %v493_v22, %v494_v18 }
 0x222   :  { %v214_v4 = vmin.f32 %v999_v55, %v1003_v57  ;;  %v227_v6 = vmax.f32 %v999_v55, %v1003_v57 }
 0x223   :  { %v213_v11 = vmin.f32 %v1005_v59, %v1011_v62  ;;  %v226_v14 = vmax.f32 %v1005_v59, %v1011_v62  ;;  %v471_v15 = vpop.xlane.xlu1 %470 }
 0x224   :  { %v1033_v23 = vmul.f32 0.5, %v471_v15  ;;  %v468_v26 = vpop.xlane.xlu0 %467 }
 0x225   :  { %v216_v30 = vmin.f32 %v213_v11, %v214_v4  ;;  %v229_v31 = vmax.f32 %v226_v14, %v227_v6  ;;  %v1035_v32 = vmul.f32 0.5, %v468_v26 }
 0x226   :  { %v483_v33 = vmin.f32 %v1013_v63, %v1033_v23  ;;  %v496_v34 = vmax.f32 %v1013_v63, %v1033_v23 }
 0x227   :  { %v217_v35 = vmin.f32 %v215_v7, %v216_v30  ;;  %v230_v36 = vmax.f32 %v228_v27, %v229_v31  ;;  %v482_v37 = vmin.f32 %v1015_v3, %v1035_v32  ;;  %v495_v38 = vmax.f32 %v1015_v3, %v1035_v32 }
 0x229   :  { %v218_v41 = vrot.slane %v217_v35, 4  ;;  %v231_v42 = vrot.slane %v230_v36, 4  ;;  %v485_v45 = vmin.f32 %v482_v37, %v483_v33  ;;  %v498_v46 = vmax.f32 %v495_v38, %v496_v34 }
 0x22b   :  { %v219_v50 = vmin.f32 %v217_v35, %v218_v41  ;;  %v232_v51 = vmax.f32 %v230_v36, %v231_v42  ;;  %v486_v53 = vmin.f32 %v484_v39, %v485_v45  ;;  %v499_v58 = vmax.f32 %v497_v40, %v498_v46 }
 0x22d   :  { %v220_v60 = vrot.slane %v219_v50, 2  ;;  %v233_v61 = vrot.slane %v232_v51, 2  ;;  %v487_v4 = vrot.slane %v486_v53, 4  ;;  %v500_v6 = vrot.slane %v499_v58, 4 }
 0x22f   :  { %v221_v7 = vmin.f32 %v219_v50, %v220_v60  ;;  %v234_v11 = vmax.f32 %v232_v51, %v233_v61  ;;  %v488_v14 = vmin.f32 %v486_v53, %v487_v4  ;;  %v501_v15 = vmax.f32 %v499_v58, %v500_v6 }
 0x231   :  { %v222_v26 = vrot.slane %v221_v7, 1  ;;  %v235_v27 = vrot.slane %v234_v11, 1  ;;  %v489_v10 = vrot.slane %v488_v14, 2  ;;  %v502_v18 = vrot.slane %v501_v15, 2 }
 0x233   :  { %v223_v19 = vmin.f32 %v221_v7, %v222_v26  ;;  %v236_v22 = vmax.f32 %v234_v11, %v235_v27  ;;  %v490_v30 = vmin.f32 %v488_v14, %v489_v10  ;;  %v503_v31 = vmax.f32 %v501_v15, %v502_v18 }
 0x235   :  { %v245_v33 = vsub.f32 %v236_v22, %v223_v19  ;;  %v491_v34 = vrot.slane %v490_v30, 1  ;;  %v504_v35 = vrot.slane %v503_v31, 1  ;;  %v237_v41 = vsub.f32 %v987_v48, %v223_v19 }
 0x236   :  { %v238_v42 = vsub.f32 %v985_v47, %v223_v19  ;;  %v239_v45 = vsub.f32 %v1005_v59, %v223_v19  ;;  %v240_v50 = vsub.f32 %v999_v55, %v223_v19  ;;  %v241_v60 = vsub.f32 %v983_v44, %v223_v19 }
 0x237   :  { %v246_v36 = vadd.f32 1e-12, %v245_v33  ;;  %v1045_v37 = vmin.f32 %v490_v30, %v491_v34  ;;  %v505_v38 = vmax.f32 %v503_v31, %v504_v35  ;;  %v242_v48 = vsub.f32 %v981_v43, %v223_v19 }
 0x238   :  { %v243_v15 = vsub.f32 %v1011_v62, %v223_v19 }
 0x239   :  { %758 = vrcp.f32 %v246_v36  ;;  %v514_v39 = vsub.f32 %v505_v38, %v1045_v37  ;;  %v506_v59 = vsub.f32 %v997_v54, %v1045_v37  ;;  %v507_v44 = vsub.f32 %v989_v49, %v1045_v37 }
 0x23a   :  { %v508_v11 = vsub.f32 %v1015_v3, %v1045_v37  ;;  %v509_v54 = vsub.f32 %v1013_v63, %v1045_v37  ;;  %v244_v49 = vsub.f32 %v1003_v57, %v223_v19  ;;  %v510_v62 = vsub.f32 %v1001_v56, %v1045_v37 }
 0x23b   :  { %v515_v40 = vadd.f32 1e-12, %v514_v39  ;;  %v511_v57 = vsub.f32 %v995_v52, %v1045_v37 }
 0x23d   :  { %760 = vrcp.f32 %v515_v40 }
 0x243   :  { %v759_v46 = vpop.eup %758 }
 0x244   :  { %v248_v51 = vmul.f32 %v759_v46, %v237_v41  ;;  %v249_v53 = vmul.f32 %v759_v46, %v238_v42  ;;  %v250_v58 = vmul.f32 %v759_v46, %v239_v45  ;;  %v251_v61 = vmul.f32 %v759_v46, %v240_v50 }
 0x245   :  { %v252_v47 = vmul.f32 %v759_v46, %v241_v60  ;;  %v253_v43 = vmul.f32 %v759_v46, %v242_v48  ;;  %v254_v30 = vmul.f32 %v759_v46, %v243_v15  ;;  %v255_v35 = vmul.f32 %v759_v46, %v244_v49 }
 0x246   :  { %v1054_v4 = vmul.f32 %v248_v51, %v837_v0  ;;  %v1057_v6 = vmul.f32 %v249_v53, %v842_v1  ;;  %v1063_v55 = vmul.f32 %v250_v58, %v865_v8  ;;  %v1073_v26 = vmul.f32 %v251_v61, %v879_v12 }
 0x247   :  { %v761_v14 = vpop.eup %760  ;;  %v1080_v3 = vmul.f32 %v252_v47, %v893_v16  ;;  %v1092_v36 = vmul.f32 %v253_v43, %v907_v20  ;;  %v1103_v40 = vmul.f32 %v254_v30, %v921_v24  ;;  %v512_v41 = vsub.f32 %v1035_v32, %v1045_v37 }
 0x248   :  { %v264_v7 = vadd.f32 %v1057_v6, %v1054_v4  ;;  %v517_v10 = vmul.f32 %v761_v14, %v506_v59  ;;  %v518_v18 = vmul.f32 %v761_v14, %v507_v44  ;;  %v519_v22 = vmul.f32 %v761_v14, %v508_v11 }
 0x249   :  { %v520_v33 = vmul.f32 %v761_v14, %v509_v54  ;;  %v521_v38 = vmul.f32 %v761_v14, %v510_v62  ;;  %v522_v45 = vmul.f32 %v761_v14, %v511_v57  ;;  %v1111_v50 = vmul.f32 %v255_v35, %v935_v28 }
 0x24a   :  { %v265_v27 = vadd.f32 %v264_v7, %v1063_v55  ;;  %v1086_v34 = vmul.f32 %v847_v2, %v517_v10  ;;  %v1089_v63 = vmul.f32 %v856_v5, %v518_v18  ;;  %v1098_v56 = vmul.f32 %v870_v9, %v519_v22 }
 0x24b   :  { %v528_v52 = vmul.f32 %v884_v13, %v520_v33  ;;  %v513_v51 = vsub.f32 %v1033_v23, %v1045_v37  ;;  %v523_v58 = vmul.f32 %v761_v14, %v512_v41  ;;  %v529_v60 = vmul.f32 %v898_v17, %v521_v38 }
 0x24c   :  { %v266_v31 = vadd.f32 %v265_v27, %v1073_v26  ;;  %v533_v39 = vadd.f32 %v1089_v63, %v1086_v34  ;;  %v530_v47 = vmul.f32 %v912_v21, %v522_v45 }
 0x24d   :  { %v524_v48 = vmul.f32 %v761_v14, %v513_v51  ;;  %v531_v44 = vmul.f32 %v926_v25, %v523_v58 }
 0x24e   :  { %v267_v19 = vadd.f32 %v266_v31, %v1080_v3  ;;  %v534_v46 = vadd.f32 %v533_v39, %v1098_v56 }
 0x24f   :  { %v532_v43 = vmul.f32 %v940_v29, %v524_v48 }
 0x250   :  { %v268_v42 = vadd.f32 %v267_v19, %v1092_v36  ;;  %v535_v61 = vadd.f32 %v534_v46, %v528_v52 }
 0x252   :  { %v269_v53 = vadd.f32 %v268_v42, %v1103_v40  ;;  %v536_v59 = vadd.f32 %v535_v61, %v529_v60 }
 0x254   :  { %v270_v32 = vadd.f32 %v269_v53, %v1111_v50  ;;  %v537_v11 = vadd.f32 %v536_v59, %v530_v47 }
 0x256   :  { %v271_v7 = vrot.slane %v270_v32, 4  ;;  %v538_v23 = vadd.f32 %v537_v11, %v531_v44 }
 0x258   :  { %v272_v15 = vadd.f32 %v271_v7, %v270_v32  ;;  %v539_v54 = vadd.f32 %v538_v23, %v532_v43 }
 0x25a   :  { %v273_v37 = vrot.slane %v272_v15, 2  ;;  %v540_v27 = vrot.slane %v539_v54, 4 }
 0x25c   :  { %v274_v10 = vadd.f32 %v273_v37, %v272_v15  ;;  %v541_v18 = vadd.f32 %v540_v27, %v539_v54 }
 0x25e   :  { %v542_v22 = vrot.slane %v541_v18, 2  ;;  %v275_v49 = vrot.slane %v274_v10, 1 }
 0x260   :  { %v543_v30 = vadd.f32 %v542_v22, %v541_v18  ;;  %v276_v62 = vadd.f32 %v275_v49, %v274_v10 }
 0x262   :  { %v544_v14 = vrot.slane %v543_v30, 1 }
 0x264   :  { %v545_v31 = vadd.f32 %v544_v14, %v543_v30 }
 0x266   :  { %v546_v33 = vadd.f32 %v545_v31, %v276_v62 }
 0x268   :  { %v556_v35 = vmul.f32 0.0078125, %v546_v33 }
 0x26a   :  { %v598_v57 = vmul.f32 %v847_v2, %v556_v35  ;;  %v599_v19 = vmul.f32 %v856_v5, %v556_v35  ;;  %v600_v38 = vmul.f32 %v870_v9, %v556_v35  ;;  %v601_v39 = vmul.f32 %v884_v13, %v556_v35  ;;  %557 = vst [vmem:[#allocation2] sm:$0x1] %v556_v35 }
 0x26b   :  { %v602_v41 = vmul.f32 %v898_v17, %v556_v35  ;;  %v603_v42 = vmul.f32 %v912_v21, %v556_v35  ;;  %v604_v45 = vmul.f32 %v926_v25, %v556_v35  ;;  %v605_v46 = vmul.f32 %v940_v29, %v556_v35 }
 0x26c   :  { %773 = shalt.err (!%p770_p4)
}
 0x26d   :  { %s774_s23 = scalar_lea.hbm %s1181_s2, 16 }
 0x26e   :  { %p775_p5 = scmp.ne.s32.totalorder %s1181_s2, %s774_s23  ;;  %p778_p6 = scmp.lt.u32.totalorder %s774_s23, %s1181_s2 }
 0x270   :  { %p780_p7 = pnand %p778_p6, %p775_p5 }
 0x272   :  { %783 = shalt.err (!%p780_p7)
}
 0x273   :  { %647 = dma.vmem_to_hbm [thread:$0]  %s645_s1, 16, %s1181_s2, [#allocation3]   ;;  %v614_v2 = vadd.f32 %v598_v57, %v1086_v34  ;;  %v615_v5 = vadd.f32 %v599_v19, %v1089_v63  ;;  %v616_v9 = vadd.f32 %v600_v38, %v1098_v56  ;;  %v617_v13 = vadd.f32 %v601_v39, %v528_v52 }
 0x274   :  { %v618_v17 = vadd.f32 %v602_v41, %v529_v60  ;;  %v619_v21 = vadd.f32 %v603_v42, %v530_v47  ;;  %v620_v25 = vadd.f32 %v604_v45, %v531_v44  ;;  %v621_v29 = vadd.f32 %v605_v46, %v532_v43  ;;  %s811_s30 = smov [#allocation4]  }
 0x275   :  { %s653_s4 = sshll.u32 %s811_s30, 4  ;;  %630 = vst [vmem:[#allocation4 + $0x40] sm:$0xff] %v614_v2  ;;  %631 = vst [vmem:[#allocation4 + $0x48] sm:$0xff] %v615_v5  ;;  %v590_v51 = vmul.f32 %v556_v35, %v837_v0  ;;  %v591_v53 = vmul.f32 %v556_v35, %v842_v1  ;;  %v592_v34 = vmul.f32 %v556_v35, %v865_v8  ;;  %s1156_s4 = int_to_ptr.vmem [resolvable:$true] %s653_s4 }
 0x276   :  { %632 = vst [vmem:[#allocation4 + $0x50] sm:$0xff] %v616_v9  ;;  %633 = vst [vmem:[#allocation4 + $0x58] sm:$0xff] %v617_v13  ;;  %v593_v63 = vmul.f32 %v556_v35, %v879_v12  ;;  %v594_v56 = vmul.f32 %v556_v35, %v893_v16  ;;  %v595_v52 = vmul.f32 %v556_v35, %v907_v20  ;;  %s784_s2 = scalar_lea.vmem %s1156_s4, 2048  ;;  %p789_p9 = scmp.lt.s32.totalorder %s1156_s4, %s1156_s4 }
 0x277   :  { %634 = vst [vmem:[#allocation4 + $0x60] sm:$0xff] %v618_v17  ;;  %635 = vst [vmem:[#allocation4 + $0x68] sm:$0xff] %v619_v21  ;;  %v596_v58 = vmul.f32 %v556_v35, %v921_v24  ;;  %v597_v60 = vmul.f32 %v556_v35, %v935_v28  ;;  %v606_v0 = vadd.f32 %v590_v51, %v1054_v4  ;;  %p785_p8 = scmp.ne.s32.totalorder %s1156_s4, %s784_s2  ;;  %p790_p10 = scmp.lt.s32.totalorder %s784_s2, %s784_s2 }
 0x278   :  { %636 = vst [vmem:[#allocation4 + $0x70] sm:$0xff] %v620_v25  ;;  %637 = vst [vmem:[#allocation4 + $0x78] sm:$0xff] %v621_v29  ;;  %v607_v1 = vadd.f32 %v591_v53, %v1057_v6  ;;  %v608_v8 = vadd.f32 %v592_v34, %v1063_v55  ;;  %v609_v12 = vadd.f32 %v593_v63, %v1073_v26 }
 0x279   :  { %v610_v16 = vadd.f32 %v594_v56, %v1080_v3  ;;  %v611_v20 = vadd.f32 %v595_v52, %v1092_v36  ;;  %v612_v24 = vadd.f32 %v596_v58, %v1103_v40  ;;  %v613_v28 = vadd.f32 %v597_v60, %v1111_v50  ;;  %622 = vst [vmem:[#allocation4] sm:$0xff] %v606_v0  ;;  %p791_p11 = por %p790_p10, %p789_p9 }
 0x27a   :  { %623 = vst [vmem:[#allocation4 + $0x8] sm:$0xff] %v607_v1  ;;  %624 = vst [vmem:[#allocation4 + $0x10] sm:$0xff] %v608_v8 }
 0x27b   :  { %625 = vst [vmem:[#allocation4 + $0x18] sm:$0xff] %v609_v12  ;;  %626 = vst [vmem:[#allocation4 + $0x20] sm:$0xff] %v610_v16  ;;  %p792_p12 = pnand %p791_p11, %p785_p8 }
 0x27c   :  { %627 = vst [vmem:[#allocation4 + $0x28] sm:$0xff] %v611_v20  ;;  %628 = vst [vmem:[#allocation4 + $0x30] sm:$0xff] %v612_v24 }
 0x27d   :  { %629 = vst [vmem:[#allocation4 + $0x38] sm:$0xff] %v613_v28 }
 0x27e   :  { %795 = shalt.err (!%p792_p12)
}
 0x27f   :  { %s796_s7 = scalar_lea.hbm %s1182_s3, 2048 }
 0x280   :  { %p797_p13 = scmp.ne.s32.totalorder %s1182_s3, %s796_s7  ;;  %p800_p0 = scmp.lt.u32.totalorder %s796_s7, %s1182_s3 }
 0x282   :  { %p802_p1 = pnand %p800_p0, %p797_p13 }
 0x284   :  { %805 = shalt.err (!%p802_p1)
}
 0x285   :  { %s812_s12 = smov 128   ;;  %s813_s13 = smov 8  }
 0x286   :  { %659 = dma.vmem_to_hbm [thread:$0]  %s1156_s4, 2048, %s1182_s3, [#allocation5], %s812_s12, %s812_s12, %s813_s13  }
 0x287   :  { %806 = dma.done.wait [#allocation3], 16  }
 0x288   :  { %807 = vsyncadd [#allocation3], 4294967280 }
 0x289   :  { %808 = dma.done.wait [#allocation5], 2048  }
 0x28a   :  { %809 = vsyncadd [#allocation5], 4294965248 }
 0x28b   :  { %666 = vsyncpa [#allocation3], 1 }
 0x28c   :  { %667 = vsyncpa [#allocation5], 1 }

// kernel: att_layer_forward.3
= control target key start
LH: loop header
LB: loop body
LE: loop exit
PB: predicated region body
PF: predicated region fallthrough
CT: control target
= control target key end

     0   :  { %v929_v48 = vmov 0   ;;  %s1318_s1 = inlined_call_operand.vmem [shape: bf16[128,128], index: 1, kind: input, shape index: {}]   ;;  %s1319_s0 = inlined_call_operand.vmem [shape: f32[128,128], index: 0, kind: input, shape index: {}]   ;;  %s1320_s3 = inlined_call_operand.vmem [shape: bf16[128,256], index: 3, kind: input, shape index: {}]   ;;  %s1321_s2 = inlined_call_operand.vmem [shape: f32[1,128], index: 2, kind: input, shape index: {}]   ;;  %s1322_s5 = inlined_call_operand.vmem [shape: f32[128,128], index: 5, kind: output, shape index: {0}]   ;;  %s1323_s4 = inlined_call_operand.vmem [shape: f32[1,256], index: 4, kind: input, shape index: {}]   ;;  %s1324_s6 = inlined_call_operand.vmem [shape: bf16[128,128], index: 6, kind: output, shape index: {1}]   ;;  %s1325_s7 = inlined_call_operand.vmem [shape: bf16[128,128], index: 7, kind: output, shape index: {2}]  }
   0x1   :  { %v897_v0 = vld [vmem:[%s1318_s1] sm:$0xff]   ;;  %v898_v1 = vld [vmem:[%s1318_s1 + $0x8] sm:$0xff]   ;;  %v899_v2 = vld [vmem:[%s1318_s1 + $0x10] sm:$0xff]   ;;  %416 = vmatprep.mubr.bf16.mxu1 %v929_v48 }
   0x2   :  { %848 = vmatprep.subr.bf16.mxu0 %v897_v0  ;;  %v900_v3 = vld [vmem:[%s1318_s1 + $0x18] sm:$0xff]   ;;  %v985_v4 = vld [vmem:[%s1319_s0] sm:$0xff]  ;;  %v990_v5 = vld [vmem:[%s1319_s0 + $0x8] sm:$0xff] }
   0x3   :  { %849 = vmatpush3.bf16.msra.mxu0 %v897_v0  ;;  %v40_v6 = vpack.c.bf16 %v990_v5, %v985_v4  ;;  %v901_v7 = vld [vmem:[%s1318_s1 + $0x20] sm:$0xff]   ;;  %v902_v9 = vld [vmem:[%s1318_s1 + $0x28] sm:$0xff]   ;;  %v910_v11 = vld [vmem:[%s1320_s3 + $0x14] ss:$8 sps:$4 sm:$0xff]  }
   0x4   :  { %850 = vmatprep.subr.bf16.mxu0 %v898_v1  ;;  %v907_v8 = vld [vmem:[%s1320_s3 + $0x4] ss:$8 sps:$4 sm:$0xff]   ;;  %v905_v10 = vld [vmem:[%s1320_s3] ss:$8 sps:$4 sm:$0xff]   ;;  %v903_v12 = vld [vmem:[%s1318_s1 + $0x30] sm:$0xff]  }
   0x5   :  { %864 = vmatprep.mubr.bf16.mxu0 %v40_v6  ;;  %880 = vmatprep.subr.bf16.mxu1 %v907_v8  ;;  %v908_v13 = vld [vmem:[%s1320_s3 + $0x10] ss:$8 sps:$4 sm:$0xff]   ;;  %v913_v14 = vld [vmem:[%s1320_s3 + $0x24] ss:$8 sps:$4 sm:$0xff]   ;;  %v911_v15 = vld [vmem:[%s1320_s3 + $0x20] ss:$8 sps:$4 sm:$0xff]  }
   0x6   :  { %888 = vmatpush1.bf16.msra.mxu1 %v905_v10  ;;  %v904_v16 = vld [vmem:[%s1318_s1 + $0x38] sm:$0xff]   ;;  %v1030_v18 = vld [vmem:[%s1319_s0 + $0x10] sm:$0xff]  ;;  %v1043_v21 = vld [vmem:[%s1319_s0 + $0x20] sm:$0xff] }
   0x7   :  { %851 = vmatpush3.bf16.msra.mxu0 %v898_v1  ;;  %881 = vmatprep.subr.bf16.mxu1 %v910_v11  ;;  %v916_v17 = vld [vmem:[%s1320_s3 + $0x34] ss:$8 sps:$4 sm:$0xff]   ;;  %v914_v20 = vld [vmem:[%s1320_s3 + $0x30] ss:$8 sps:$4 sm:$0xff]   ;;  %v1048_v22 = vld [vmem:[%s1319_s0 + $0x28] sm:$0xff] }
   0x8   :  { %852 = vmatprep.subr.bf16.mxu0 %v899_v2  ;;  %v1035_v19 = vld [vmem:[%s1319_s0 + $0x18] sm:$0xff]  ;;  %v919_v23 = vld [vmem:[%s1320_s3 + $0x44] ss:$8 sps:$4 sm:$0xff]   ;;  %v42_v25 = vpack.c.bf16 %v1048_v22, %v1043_v21  ;;  %v917_v26 = vld [vmem:[%s1320_s3 + $0x40] ss:$8 sps:$4 sm:$0xff]  }
   0x9   :  { %v41_v24 = vpack.c.bf16 %v1035_v19, %v1030_v18  ;;  %v922_v27 = vld [vmem:[%s1320_s3 + $0x54] ss:$8 sps:$4 sm:$0xff]   ;;  %v920_v30 = vld [vmem:[%s1320_s3 + $0x50] ss:$8 sps:$4 sm:$0xff]   ;;  %v1079_v31 = vld [vmem:[%s1319_s0 + $0x40] sm:$0xff] }
   0xa   :  { %889 = vmatpush1.bf16.msra.mxu1 %v908_v13  ;;  %v1066_v28 = vld [vmem:[%s1319_s0 + $0x30] sm:$0xff]  ;;  %v1071_v29 = vld [vmem:[%s1319_s0 + $0x38] sm:$0xff]  ;;  %v1084_v32 = vld [vmem:[%s1319_s0 + $0x48] sm:$0xff] }
   0xb   :  { %853 = vmatpush3.bf16.msra.mxu0 %v899_v2  ;;  %882 = vmatprep.subr.bf16.mxu1 %v913_v14  ;;  %v43_v33 = vpack.c.bf16 %v1071_v29, %v1066_v28  ;;  %v44_v34 = vpack.c.bf16 %v1084_v32, %v1079_v31  ;;  %v1093_v35 = vld [vmem:[%s1319_s0 + $0x50] sm:$0xff]  ;;  %v1098_v36 = vld [vmem:[%s1319_s0 + $0x58] sm:$0xff]  ;;  %v1103_v37 = vld [vmem:[%s1319_s0 + $0x60] sm:$0xff] }
   0xc   :  { %854 = vmatprep.subr.bf16.mxu0 %v900_v3  ;;  %v1108_v38 = vld [vmem:[%s1319_s0 + $0x68] sm:$0xff]  ;;  %v45_v39 = vpack.c.bf16 %v1098_v36, %v1093_v35  ;;  %v1117_v41 = vld [vmem:[%s1319_s0 + $0x70] sm:$0xff]  ;;  %v1122_v42 = vld [vmem:[%s1319_s0 + $0x78] sm:$0xff] }
   0xd   :  { %v46_v40 = vpack.c.bf16 %v1108_v38, %v1103_v37  ;;  %v47_v43 = vpack.c.bf16 %v1122_v42, %v1117_v41  ;;  %v925_v44 = vld [vmem:[%s1320_s3 + $0x64] ss:$8 sps:$4 sm:$0xff]   ;;  %v923_v45 = vld [vmem:[%s1320_s3 + $0x60] ss:$8 sps:$4 sm:$0xff]   ;;  %v928_v46 = vld [vmem:[%s1320_s3 + $0x74] ss:$8 sps:$4 sm:$0xff]  }
   0xe   :  { %890 = vmatpush1.bf16.msra.mxu1 %v911_v15  ;;  %v926_v47 = vld [vmem:[%s1320_s3 + $0x70] ss:$8 sps:$4 sm:$0xff]   ;;  %v1143_v49 = vld [vmem:[%s1321_s2] ss:$0 sm:$0xff] }
   0xf   :  { %855 = vmatpush3.bf16.msra.mxu0 %v900_v3  ;;  %883 = vmatprep.subr.bf16.mxu1 %v916_v17 }
  0x10   :  { %856 = vmatprep.subr.bf16.mxu0 %v901_v7 }
  0x12   :  { %891 = vmatpush1.bf16.msra.mxu1 %v914_v20 }
  0x13   :  { %857 = vmatpush3.bf16.msra.mxu0 %v901_v7  ;;  %884 = vmatprep.subr.bf16.mxu1 %v919_v23 }
  0x14   :  { %858 = vmatprep.subr.bf16.mxu0 %v902_v9 }
  0x16   :  { %892 = vmatpush1.bf16.msra.mxu1 %v917_v26 }
  0x17   :  { %859 = vmatpush3.bf16.msra.mxu0 %v902_v9  ;;  %885 = vmatprep.subr.bf16.mxu1 %v922_v27 }
  0x18   :  { %860 = vmatprep.subr.bf16.mxu0 %v903_v12 }
  0x1a   :  { %893 = vmatpush1.bf16.msra.mxu1 %v920_v30 }
  0x1b   :  { %861 = vmatpush3.bf16.msra.mxu0 %v903_v12  ;;  %886 = vmatprep.subr.bf16.mxu1 %v925_v44 }
  0x1c   :  { %862 = vmatprep.subr.bf16.mxu0 %v904_v16 }
  0x1e   :  { %894 = vmatpush1.bf16.msra.mxu1 %v923_v45 }
  0x1f   :  { %863 = vmatpush3.bf16.msra.mxu0 %v904_v16  ;;  %887 = vmatprep.subr.bf16.mxu1 %v928_v46 }
  0x20   :  { %364 = vmatprep.subr.bf16.mxu0 %v907_v8 }
  0x22   :  { %865 = vmatmul.mubr.bf16.vlgmr.msra.gmra.mrb[0].mxu0 %v41_v24  ;;  %895 = vmatpush1.bf16.msra.mxu1 %v926_v47 }
  0x23   :  { %868 = vmatprep.mubr.bf16.mxu0 %v42_v25  ;;  %365 = vmatpush1.bf16.msra.mxu0 %v905_v10 }
  0x24   :  { %366 = vmatprep.subr.bf16.mxu0 %v910_v11 }
  0x27   :  { %367 = vmatpush1.bf16.msra.mxu0 %v908_v13 }
  0x28   :  { %368 = vmatprep.subr.bf16.mxu0 %v913_v14 }
  0x2a   :  { %869 = vmatmul.mubr.bf16.gmra.mrb[4].mxu0 %v43_v33 }
  0x2b   :  { %872 = vmatprep.mubr.bf16.mxu0 %v44_v34  ;;  %369 = vmatpush1.bf16.msra.mxu0 %v911_v15 }
  0x2c   :  { %370 = vmatprep.subr.bf16.mxu0 %v916_v17 }
  0x2f   :  { %371 = vmatpush1.bf16.msra.mxu0 %v914_v20 }
  0x30   :  { %372 = vmatprep.subr.bf16.mxu0 %v919_v23 }
  0x32   :  { %873 = vmatmul.mubr.bf16.gmra.mrb[8].mxu0 %v45_v39 }
  0x33   :  { %876 = vmatprep.mubr.bf16.mxu0 %v46_v40  ;;  %373 = vmatpush1.bf16.msra.mxu0 %v917_v26 }
  0x34   :  { %374 = vmatprep.subr.bf16.mxu0 %v922_v27 }
  0x37   :  { %375 = vmatpush1.bf16.msra.mxu0 %v920_v30 }
  0x38   :  { %376 = vmatprep.subr.bf16.mxu0 %v925_v44 }
  0x3a   :  { %877 = vmatmul.mubr.bf16.gmra.mrb[12].mxu0 %v47_v43 }
  0x3b   :  { %377 = vmatpush1.bf16.msra.mxu0 %v923_v45  ;;  %396 = vmatprep.mubr.bf16.mxu0 %v929_v48  ;;  %v272_v45 = vld [vmem:[%s1323_s4] sm:$0x3] }
  0x3c   :  { %378 = vmatprep.subr.bf16.mxu0 %v928_v46 }
  0x3f   :  { %379 = vmatpush1.bf16.msra.mxu0 %v926_v47 }
  0xf5   :  { %v866_v50 = vpop.f32.mrb[0].mxu0 }
  0xf6   :  { %v162_v51 = vadd.f32 %v866_v50, %v1143_v49  ;;  %v153_v52 = vpop.f32.mrb[1].mxu0 }
  0xf7   :  { %v154_v53 = vadd.f32 %v1143_v49, %v153_v52  ;;  %v867_v54 = vpop.f32.mrb[2].mxu0 }
  0xf8   :  { %v218_v55 = vadd.f32 %v162_v51, %v1030_v18  ;;  %v165_v56 = vadd.f32 %v867_v54, %v1143_v49  ;;  %v156_v57 = vpop.f32.mrb[3].mxu0 }
  0xf9   :  { %v216_v58 = vadd.f32 %v154_v53, %v985_v4  ;;  %v157_v59 = vadd.f32 %v1143_v49, %v156_v57 }
  0xfa   :  { %234 = vst [vmem:[%s1322_s5 + $0x10] sm:$0xff] %v218_v55  ;;  %v219_v60 = vadd.f32 %v165_v56, %v1035_v19 }
  0xfb   :  { %232 = vst [vmem:[%s1322_s5] sm:$0xff] %v216_v58  ;;  %v217_v61 = vadd.f32 %v157_v59, %v990_v5 }
  0xfc   :  { %235 = vst [vmem:[%s1322_s5 + $0x18] sm:$0xff] %v219_v60  ;;  %v249_v62 = vpack.c.bf16 %v219_v60, %v218_v55 }
  0xfd   :  { %233 = vst [vmem:[%s1322_s5 + $0x8] sm:$0xff] %v217_v61  ;;  %v248_v63 = vpack.c.bf16 %v217_v61, %v216_v58  ;;  %v870_v0 = vpop.f32.mrb[4].mxu0 }
  0xfe   :  { %v178_v1 = vadd.f32 %v870_v0, %v1143_v49  ;;  %v169_v2 = vpop.f32.mrb[5].mxu0 }
  0xff   :  { %v170_v3 = vadd.f32 %v1143_v49, %v169_v2  ;;  %v871_v4 = vpop.f32.mrb[6].mxu0  ;;  %397 = vmatmul.mubr.bf16.vlgmr.msra.gmra.mrb[16].mxu0 %v248_v63 }
 0x100   :  { %v222_v5 = vadd.f32 %v178_v1, %v1066_v28  ;;  %v181_v6 = vadd.f32 %v871_v4, %v1143_v49  ;;  %v172_v7 = vpop.f32.mrb[7].mxu0  ;;  %406 = vmatprep.mubr.bf16.mxu0 %v929_v48 }
 0x101   :  { %v220_v8 = vadd.f32 %v170_v3, %v1043_v21  ;;  %v173_v9 = vadd.f32 %v1143_v49, %v172_v7 }
 0x102   :  { %238 = vst [vmem:[%s1322_s5 + $0x30] sm:$0xff] %v222_v5  ;;  %v223_v10 = vadd.f32 %v181_v6, %v1071_v29 }
 0x103   :  { %236 = vst [vmem:[%s1322_s5 + $0x20] sm:$0xff] %v220_v8  ;;  %v221_v11 = vadd.f32 %v173_v9, %v1048_v22 }
 0x104   :  { %239 = vst [vmem:[%s1322_s5 + $0x38] sm:$0xff] %v223_v10  ;;  %v251_v12 = vpack.c.bf16 %v223_v10, %v222_v5 }
 0x105   :  { %237 = vst [vmem:[%s1322_s5 + $0x28] sm:$0xff] %v221_v11  ;;  %v250_v13 = vpack.c.bf16 %v221_v11, %v220_v8  ;;  %v874_v14 = vpop.f32.mrb[8].mxu0 }
 0x106   :  { %v194_v15 = vadd.f32 %v874_v14, %v1143_v49  ;;  %v185_v16 = vpop.f32.mrb[9].mxu0 }
 0x107   :  { %407 = vmatmul.mubr.bf16.gmra.mrb[20].mxu0 %v249_v62  ;;  %417 = vmatmul.mubr.bf16.vlgmr.msra.gmra.mrb[0].mxu1 %v250_v13  ;;  %v186_v17 = vadd.f32 %v1143_v49, %v185_v16  ;;  %v875_v18 = vpop.f32.mrb[10].mxu0 }
 0x108   :  { %v226_v19 = vadd.f32 %v194_v15, %v1093_v35  ;;  %v197_v20 = vadd.f32 %v875_v18, %v1143_v49  ;;  %v188_v21 = vpop.f32.mrb[11].mxu0  ;;  %426 = vmatprep.mubr.bf16.mxu1 %v929_v48 }
 0x109   :  { %v224_v22 = vadd.f32 %v186_v17, %v1079_v31  ;;  %v189_v23 = vadd.f32 %v1143_v49, %v188_v21 }
 0x10a   :  { %242 = vst [vmem:[%s1322_s5 + $0x50] sm:$0xff] %v226_v19  ;;  %v227_v24 = vadd.f32 %v197_v20, %v1098_v36 }
 0x10b   :  { %240 = vst [vmem:[%s1322_s5 + $0x40] sm:$0xff] %v224_v22  ;;  %v225_v25 = vadd.f32 %v189_v23, %v1084_v32 }
 0x10c   :  { %243 = vst [vmem:[%s1322_s5 + $0x58] sm:$0xff] %v227_v24  ;;  %v253_v26 = vpack.c.bf16 %v227_v24, %v226_v19 }
 0x10d   :  { %241 = vst [vmem:[%s1322_s5 + $0x48] sm:$0xff] %v225_v25  ;;  %v252_v27 = vpack.c.bf16 %v225_v25, %v224_v22  ;;  %v878_v28 = vpop.f32.mrb[12].mxu0 }
 0x10e   :  { %v210_v29 = vadd.f32 %v878_v28, %v1143_v49  ;;  %v201_v30 = vpop.f32.mrb[13].mxu0 }
 0x10f   :  { %427 = vmatmul.mubr.bf16.gmra.mrb[4].mxu1 %v251_v12  ;;  %v202_v31 = vadd.f32 %v1143_v49, %v201_v30  ;;  %v879_v33 = vpop.f32.mrb[14].mxu0 }
 0x110   :  { %436 = vmatprep.mubr.bf16.mxu1 %v929_v48  ;;  %v230_v32 = vadd.f32 %v210_v29, %v1117_v41  ;;  %v213_v34 = vadd.f32 %v879_v33, %v1143_v49  ;;  %v204_v35 = vpop.f32.mrb[15].mxu0 }
 0x111   :  { %v228_v36 = vadd.f32 %v202_v31, %v1103_v37  ;;  %v205_v39 = vadd.f32 %v1143_v49, %v204_v35 }
 0x112   :  { %246 = vst [vmem:[%s1322_s5 + $0x70] sm:$0xff] %v230_v32  ;;  %v231_v40 = vadd.f32 %v213_v34, %v1122_v42 }
 0x113   :  { %244 = vst [vmem:[%s1322_s5 + $0x60] sm:$0xff] %v228_v36  ;;  %v229_v43 = vadd.f32 %v205_v39, %v1108_v38  ;;  %v274_v38 = vlaneseq }
 0x114   :  { %247 = vst [vmem:[%s1322_s5 + $0x78] sm:$0xff] %v231_v40  ;;  %v255_v41 = vpack.c.bf16 %v231_v40, %v230_v32 }
 0x115   :  { %245 = vst [vmem:[%s1322_s5 + $0x68] sm:$0xff] %v229_v43  ;;  %v254_v37 = vpack.c.bf16 %v229_v43, %v228_v36  ;;  %v275_v42 = vshrl.u32 %v274_v38, 7 }
 0x117   :  { %437 = vmatmul.mubr.bf16.gmra.mrb[8].mxu1 %v252_v27  ;;  %v276_v44 = vsub.s32 0, %v275_v42  ;;  %v280_v46 = vsub.s32 1, %v275_v42 }
 0x118   :  { %446 = vmatprep.mubr.bf16.mxu1 %v929_v48 }
 0x119   :  { %v1234_v47 = vrot.slane %v272_v45, %v276_v44  ;;  %v1236_v50 = vrot.slane %v272_v45, %v280_v46 }
 0x11f   :  { %447 = vmatmul.mubr.bf16.gmra.mrb[12].mxu1 %v253_v26 }
 0x120   :  { %456 = vmatprep.mubr.bf16.mxu1 %v929_v48 }
 0x127   :  { %457 = vmatmul.mubr.bf16.gmra.mrb[16].mxu1 %v254_v37 }
 0x128   :  { %466 = vmatprep.mubr.bf16.mxu1 %v929_v48 }
 0x12f   :  { %467 = vmatmul.mubr.bf16.gmra.mrb[20].mxu1 %v255_v41 }
 0x1d2   :  { %v398_v49 = vpop.f32.mrb[16].mxu0 }
 0x1d3   :  { %v400_v51 = vpop.f32.mrb[17].mxu0  ;;  %v399_v53 = vadd.f32 %v398_v49, %v1234_v47 }
 0x1d4   :  { %v402_v52 = vpop.f32.mrb[18].mxu0  ;;  %v401_v55 = vadd.f32 %v400_v51, %v1236_v50 }
 0x1d5   :  { %v403_v48 = vadd.f32 %v402_v52, %v1234_v47  ;;  %v404_v54 = vpop.f32.mrb[19].mxu0 }
 0x1d6   :  { %v405_v56 = vadd.f32 %v404_v54, %v1236_v50 }
 0x1d7   :  { %v741_v57 = vpack.c.bf16 %v403_v48, %v399_v53 }
 0x1d8   :  { %v781_v58 = vpack.c.bf16 %v405_v56, %v401_v55 }
 0x1d9   :  { %742 = vst [vmem:[%s1324_s6] sm:$0xff] %v741_v57  }
 0x1da   :  { %782 = vst [vmem:[%s1325_s7] sm:$0xff] %v781_v58   ;;  %v408_v59 = vpop.f32.mrb[20].mxu0  ;;  %v418_v60 = vpop.f32.mrb[0].mxu1 }
 0x1db   :  { %v410_v61 = vpop.f32.mrb[21].mxu0  ;;  %v420_v62 = vpop.f32.mrb[1].mxu1  ;;  %v409_v1 = vadd.f32 %v408_v59, %v1234_v47  ;;  %v419_v2 = vadd.f32 %v418_v60, %v1234_v47 }
 0x1dc   :  { %v412_v63 = vpop.f32.mrb[22].mxu0  ;;  %v422_v0 = vpop.f32.mrb[2].mxu1  ;;  %v411_v7 = vadd.f32 %v410_v61, %v1236_v50  ;;  %v421_v8 = vadd.f32 %v420_v62, %v1236_v50 }
 0x1dd   :  { %v413_v3 = vadd.f32 %v412_v63, %v1234_v47  ;;  %v423_v4 = vadd.f32 %v422_v0, %v1234_v47  ;;  %v414_v5 = vpop.f32.mrb[23].mxu0  ;;  %v424_v6 = vpop.f32.mrb[3].mxu1 }
 0x1de   :  { %v415_v9 = vadd.f32 %v414_v5, %v1236_v50  ;;  %v425_v10 = vadd.f32 %v424_v6, %v1236_v50 }
 0x1df   :  { %v746_v11 = vpack.c.bf16 %v413_v3, %v409_v1  ;;  %v751_v12 = vpack.c.bf16 %v423_v4, %v419_v2 }
 0x1e0   :  { %v786_v13 = vpack.c.bf16 %v415_v9, %v411_v7  ;;  %v791_v14 = vpack.c.bf16 %v425_v10, %v421_v8 }
 0x1e1   :  { %818 = vst [vmem:[%s1324_s6 + $0x8] sm:$0xff] %v746_v11   ;;  %819 = vst [vmem:[%s1324_s6 + $0x10] sm:$0xff] %v751_v12  }
 0x1e2   :  { %825 = vst [vmem:[%s1325_s7 + $0x8] sm:$0xff] %v786_v13   ;;  %826 = vst [vmem:[%s1325_s7 + $0x10] sm:$0xff] %v791_v14   ;;  %v428_v15 = vpop.f32.mrb[4].mxu1 }
 0x1e3   :  { %v430_v16 = vpop.f32.mrb[5].mxu1  ;;  %v429_v18 = vadd.f32 %v428_v15, %v1234_v47 }
 0x1e4   :  { %v432_v17 = vpop.f32.mrb[6].mxu1  ;;  %v431_v21 = vadd.f32 %v430_v16, %v1236_v50 }
 0x1e5   :  { %v433_v19 = vadd.f32 %v432_v17, %v1234_v47  ;;  %v434_v20 = vpop.f32.mrb[7].mxu1 }
 0x1e6   :  { %v435_v22 = vadd.f32 %v434_v20, %v1236_v50 }
 0x1e7   :  { %v756_v23 = vpack.c.bf16 %v433_v19, %v429_v18 }
 0x1e8   :  { %v796_v24 = vpack.c.bf16 %v435_v22, %v431_v21 }
 0x1e9   :  { %820 = vst [vmem:[%s1324_s6 + $0x18] sm:$0xff] %v756_v23  }
 0x1ea   :  { %827 = vst [vmem:[%s1325_s7 + $0x18] sm:$0xff] %v796_v24   ;;  %v438_v25 = vpop.f32.mrb[8].mxu1 }
 0x1eb   :  { %v440_v26 = vpop.f32.mrb[9].mxu1  ;;  %v439_v28 = vadd.f32 %v438_v25, %v1234_v47 }
 0x1ec   :  { %v442_v27 = vpop.f32.mrb[10].mxu1  ;;  %v441_v31 = vadd.f32 %v440_v26, %v1236_v50 }
 0x1ed   :  { %v443_v29 = vadd.f32 %v442_v27, %v1234_v47  ;;  %v444_v30 = vpop.f32.mrb[11].mxu1 }
 0x1ee   :  { %v445_v33 = vadd.f32 %v444_v30, %v1236_v50 }
 0x1ef   :  { %v761_v32 = vpack.c.bf16 %v443_v29, %v439_v28 }
 0x1f0   :  { %v801_v34 = vpack.c.bf16 %v445_v33, %v441_v31 }
 0x1f1   :  { %821 = vst [vmem:[%s1324_s6 + $0x20] sm:$0xff] %v761_v32  }
 0x1f2   :  { %828 = vst [vmem:[%s1325_s7 + $0x20] sm:$0xff] %v801_v34   ;;  %v448_v35 = vpop.f32.mrb[12].mxu1 }
 0x1f3   :  { %v450_v36 = vpop.f32.mrb[13].mxu1  ;;  %v449_v40 = vadd.f32 %v448_v35, %v1234_v47 }
 0x1f4   :  { %v452_v39 = vpop.f32.mrb[14].mxu1  ;;  %v451_v37 = vadd.f32 %v450_v36, %v1236_v50 }
 0x1f5   :  { %v453_v43 = vadd.f32 %v452_v39, %v1234_v47  ;;  %v454_v41 = vpop.f32.mrb[15].mxu1 }
 0x1f6   :  { %v455_v38 = vadd.f32 %v454_v41, %v1236_v50 }
 0x1f7   :  { %v766_v42 = vpack.c.bf16 %v453_v43, %v449_v40 }
 0x1f8   :  { %v806_v44 = vpack.c.bf16 %v455_v38, %v451_v37 }
 0x1f9   :  { %822 = vst [vmem:[%s1324_s6 + $0x28] sm:$0xff] %v766_v42  }
 0x1fa   :  { %829 = vst [vmem:[%s1325_s7 + $0x28] sm:$0xff] %v806_v44   ;;  %v458_v45 = vpop.f32.mrb[16].mxu1 }
 0x1fb   :  { %v460_v46 = vpop.f32.mrb[17].mxu1  ;;  %v459_v51 = vadd.f32 %v458_v45, %v1234_v47 }
 0x1fc   :  { %v462_v49 = vpop.f32.mrb[18].mxu1  ;;  %v461_v48 = vadd.f32 %v460_v46, %v1236_v50 }
 0x1fd   :  { %v463_v52 = vadd.f32 %v462_v49, %v1234_v47  ;;  %v464_v53 = vpop.f32.mrb[19].mxu1 }
 0x1fe   :  { %v465_v54 = vadd.f32 %v464_v53, %v1236_v50 }
 0x1ff   :  { %v771_v55 = vpack.c.bf16 %v463_v52, %v459_v51 }
 0x200   :  { %v811_v56 = vpack.c.bf16 %v465_v54, %v461_v48 }
 0x201   :  { %823 = vst [vmem:[%s1324_s6 + $0x30] sm:$0xff] %v771_v55  }
 0x202   :  { %830 = vst [vmem:[%s1325_s7 + $0x30] sm:$0xff] %v811_v56   ;;  %v468_v57 = vpop.f32.mrb[20].mxu1 }
 0x203   :  { %v470_v58 = vpop.f32.mrb[21].mxu1  ;;  %v469_v60 = vadd.f32 %v468_v57, %v1234_v47 }
 0x204   :  { %v472_v59 = vpop.f32.mrb[22].mxu1  ;;  %v471_v63 = vadd.f32 %v470_v58, %v1236_v50 }
 0x205   :  { %v473_v61 = vadd.f32 %v472_v59, %v1234_v47  ;;  %v474_v62 = vpop.f32.mrb[23].mxu1 }
 0x206   :  { %v475_v0 = vadd.f32 %v474_v62, %v1236_v50 }
 0x207   :  { %v776_v1 = vpack.c.bf16 %v473_v61, %v469_v60 }
 0x208   :  { %v816_v2 = vpack.c.bf16 %v475_v0, %v471_v63 }
 0x209   :  { %824 = vst [vmem:[%s1324_s6 + $0x38] sm:$0xff] %v776_v1  }
 0x20a   :  { %831 = vst [vmem:[%s1325_s7 + $0x38] sm:$0xff] %v816_v2  }

</bundles_post_ra>
